<compile_context>
chip_gen: v6e
topology: v6e:2x2x1
jax: 0.10.0
libtpu: 0.0.40
codegen_flags: <defaults>
</compile_context>

<pallas_src>
import functools

import numpy as np
import jax
import jax.numpy as jnp
from jax import lax
from jax.experimental import pallas as pl
from jax.experimental.pallas import tpu as pltpu  # noqa: F401  (defaults used)

BN_EPS = 1e-5


def next_power_of2(x):
    return 1 << (int(x) - 1).bit_length()


def conv_out_len(lin, k, stride, pad, dilation):
    return (lin + 2 * pad - dilation * (k - 1) - 1) // stride + 1


# --------------------- static geometry (host, trace-time) ---------------------

def make_taps_T(B, Lin, Lout, K, stride, pad, dilation):
    """G[k] of shape (B*Lout, B*Lin): (G[k] @ X)[b*Lout+l] = Xpad[b, l*s + k*d - pad]."""
    g = np.zeros((K, B * Lout, B * Lin), np.float32)
    for k in range(K):
        for b in range(B):
            for l in range(Lout):
                m = l * stride + k * dilation - pad
                if 0 <= m < Lin:
                    g[k, b * Lout + l, b * Lin + m] = 1.0
    return jnp.asarray(g)


def make_pool_T(B, L):
    """ApproximateGlobalAveragePooling1D as a (B, B*L) matrix (sum / next_pow2(L))."""
    inv = 1.0 / next_power_of2(L)
    p = np.zeros((B, B * L), np.float32)
    for b in range(B):
        p[b, b * L:(b + 1) * L] = inv
    return jnp.asarray(p)


def _fold_conv_bn_T(w, bn=None):
    """(Cout, Cin, K) torch conv weight -> (K, Cin, Cout) taps with BN scale folded in,
    plus a (1, Cout) shift row."""
    cout = w.shape[0]
    if bn is not None:
        scale = bn["gamma"] / jnp.sqrt(bn["var"] + BN_EPS)
        shift = bn["beta"] - bn["mean"] * scale
    else:
        scale = jnp.ones((cout,), jnp.float32)
        shift = jnp.zeros((cout,), jnp.float32)
    wt = jnp.transpose(w, (2, 1, 0)) * scale[None, None, :]
    return wt, shift.reshape(1, cout)


# ------------------------------ fused Pallas kernel ---------------------------

def _fused_forward_kernel(*refs, thresholds, clip, n_labels):
    (x_ref, w_in, g_in,
     b1w1, b1g1, b1h1, b1w2, b1g2, b1h2, b1wd, b1gd, b1hd,
     e1w, e1h, e1w2, e1p,
     b2w1, b2g1, b2h1, b2w2, b2g2, b2h2, b2wd, b2gd, b2hd,
     e2w, e2h, e2w2, e2p,
     fcw,
     o_ref) = refs

    f32 = jnp.float32

    def conv(X, w_ref, g_ref, h_ref=None, act=None):
        # Conv1d(bias=False) [+ folded BN shift] [+ activation], as K tap matmuls.
        y = None
        for k in range(w_ref.shape[0]):
            t = jnp.dot(g_ref[k],
                        jnp.dot(X, w_ref[k], preferred_element_type=f32),
                        preferred_element_type=f32)
            y = t if y is None else y + t
        if h_ref is not None:
            y = y + h_ref[...]
        if act == "relu":
            y = jnp.maximum(y, 0.0)
        elif act == "hardtanh":
            y = jnp.clip(y, 0.0, clip)
        return y

    def res_block(a, w1, g1, h1, w2, g2, h2, wd, gd, hd):
        # convs: conv+BN+Hardtanh -> conv+BN ; downsample: conv+BN+ReLU ; add ; Hardtanh
        y = conv(conv(a, w1, g1, h1, "hardtanh"), w2, g2, h2)
        d = conv(a, wd, gd, hd, "relu")
        return jnp.clip(y + d, 0.0, clip)

    def exit_head(a, w_ref, h_ref, w2_ref, p_ref):
        # 1x1 conv + BN + ReLU -> approx global avg pool -> (dropout = id) -> 1x1 conv
        e = jnp.maximum(jnp.dot(a, w_ref[...], preferred_element_type=f32) + h_ref[...], 0.0)
        p = jnp.dot(p_ref[...], e, preferred_element_type=f32)          # (B, n_labels)
        return jnp.dot(p, w2_ref[...], preferred_element_type=f32)      # (B, n_labels)

    # input layer: Conv1d(height, 16, 3, 1, bias=False); no BN/act/dropout by default
    a0 = conv(x_ref[...], w_in, g_in)
    a1 = res_block(a0, b1w1, b1g1, b1h1, b1w2, b1g2, b1h2, b1wd, b1gd, b1hd)
    ex1 = exit_head(a1, e1w, e1h, e1w2, e1p)
    a2 = res_block(a1, b2w1, b2g1, b2h1, b2w2, b2g2, b2h2, b2wd, b2gd, b2hd)
    ex2 = exit_head(a2, e2w, e2h, e2w2, e2p)

    # main head: approx global avg pool -> flatten -> Linear(bias=False)
    feat = jnp.dot(e2p[...], a2, preferred_element_type=f32)             # (B, C2)
    final = jnp.dot(feat, fcw[...], preferred_element_type=f32)          # (B, n_labels)

    # eval-mode early-exit selection (estimated_losses_sum + masking)
    mask = jnp.ones_like(final)
    glob = jnp.zeros_like(final)
    for result, thr in zip((ex1, ex2), thresholds):
        th = jnp.clip(result, -32.0, 31.9999389611)
        # sum_j th[i,j] - N * th[i, argmax_j result[i,j]] == sum - N*max (clamp is monotone)
        losses = (jnp.sum(th, axis=1, keepdims=True)
                  - n_labels * jnp.max(th, axis=1, keepdims=True))       # (B, 1)
        cond = losses < thr
        masked = jnp.where(cond, result, 0.0)
        masked = jnp.where(mask > 0.0, masked, 0.0)
        mask = jnp.where(jnp.broadcast_to(cond, mask.shape), 0.0, mask)
        glob = glob + masked
    o_ref[...] = (glob + jnp.where(mask > 0.0, final, 0.0)).astype(o_ref.dtype)


# ------------------------------ host-side assembly ----------------------------

def _prep_inputs(params, x, config):
    B, c_in, L0 = x.shape
    dil = config["dilation"]
    inputs = []

    # activation in channels-last row layout: (B*L, C)
    inputs.append(jnp.transpose(x, (0, 2, 1)).reshape(B * L0, c_in))

    # input layer conv (no BN)
    k1, s1 = config["conv1_size"], config["conv1_stride"]
    L1 = conv_out_len(L0, k1, s1, 0, 1)
    inputs += [jnp.transpose(params["conv1"], (2, 1, 0)),
               make_taps_T(B, L0, L1, k1, s1, 0, 1)]

    lcur = L1
    for i, name in enumerate(["block1", "block2"], start=1):
        blk = params[name]
        size = config[f"{name}_conv_size"]
        stride = config[f"{name}_stride"]
        d = dil ** i
        pad = d * (size // 2)
        lout = conv_out_len(lcur, size, stride, pad, d)

        w1, h1 = _fold_conv_bn_T(blk["w1"], blk["bn1"])
        w2, h2 = _fold_conv_bn_T(blk["w2"], blk["bn2"])
        wd, hd = _fold_conv_bn_T(blk["w_ds"], blk["bn_ds"])
        inputs += [w1, make_taps_T(B, lcur, lout, size, stride, pad, d), h1,
                   w2, make_taps_T(B, lout, lout, size, 1, pad, d), h2,
                   wd, make_taps_T(B, lcur, lout, 1, stride, 0, 1), hd]

        ex = params[f"exit{i}"]
        we, he = _fold_conv_bn_T(ex["w1"], ex["bn"])
        inputs += [we[0],                                  # (C, n)   1x1 conv + folded BN
                   he,                                     # (1, n)
                   jnp.transpose(ex["w2"][:, :, 0]),       # (n, n)   1x1 conv
                   make_pool_T(B, lout)]                   # (B, B*L) approx GAP
        lcur = lout

    inputs.append(jnp.transpose(params["fc"]))             # (C2, n)  Linear weight^T
    return inputs, B


def branchy_tcresnet_forward(params, x, config):
    inputs, B = _prep_inputs(params, x, config)
    kern = functools.partial(
        _fused_forward_kernel,
        thresholds=tuple(float(t) for t in config["earlyexit_thresholds"]),
        clip=float(config["clipping_value"]),
        n_labels=config["n_labels"])
    # Single kernel, no grid: every operand is a full-array VMEM block (total
    # weights + activations << 1 MiB, fits all generations incl. v7x's 64 MiB).
    return pl.pallas_call(
        kern,
        out_shape=jax.ShapeDtypeStruct((B, config["n_labels"]), jnp.float32),
    )(*inputs)


# ------------------------------ model config / params -------------------------

CONFIG = dict(
    n_labels=10, width=16, height=4, dropout_prob=0.5, width_multiplier=1.0,
    fully_convolutional=False, dilation=1, clipping_value=8.0,
    bottleneck=[0, 0], channel_division=[2, 2], separable=[0, 0], small=False,
    inputlayer=True, act="relu",
    conv1_size=3, conv1_stride=1, conv1_output_channels=16,
    block1_conv_size=3, block1_stride=2, block1_output_channels=24,
    block2_conv_size=3, block2_stride=2, block2_output_channels=32,
    earlyexit_thresholds=[-8.0, -6.0],
    earlyexit_lossweights=[0.3, 0.3],
)


def _init(key, shape, scale=0.1):
    return scale * jax.random.normal(key, shape, jnp.float32)


def _init_bn(key, c):
    k1, k2, k3, k4 = jax.random.split(key, 4)
    return dict(gamma=1.0 + 0.1 * jax.random.normal(k1, (c,), jnp.float32),
                beta=0.1 * jax.random.normal(k2, (c,), jnp.float32),
                mean=0.1 * jax.random.normal(k3, (c,), jnp.float32),
                var=1.0 + 0.1 * jax.random.uniform(k4, (c,), jnp.float32))


def init_params(key, cfg):
    wm = cfg["width_multiplier"]
    n = cfg["n_labels"]
    c_in = cfg["height"]
    c1 = int(cfg["conv1_output_channels"] * wm)
    cb1 = int(cfg["block1_output_channels"] * wm)
    cb2 = int(cfg["block2_output_channels"] * wm)
    ks = jax.random.split(key, 20)
    p = {"conv1": _init(ks[0], (c1, c_in, cfg["conv1_size"]))}
    p["block1"] = dict(
        w1=_init(ks[1], (cb1, c1, cfg["block1_conv_size"])), bn1=_init_bn(ks[2], cb1),
        w2=_init(ks[3], (cb1, cb1, cfg["block1_conv_size"])), bn2=_init_bn(ks[4], cb1),
        w_ds=_init(ks[5], (cb1, c1, 1)), bn_ds=_init_bn(ks[6], cb1))
    p["block2"] = dict(
        w1=_init(ks[7], (cb2, cb1, cfg["block2_conv_size"])), bn1=_init_bn(ks[8], cb2),
        w2=_init(ks[9], (cb2, cb2, cfg["block2_conv_size"])), bn2=_init_bn(ks[10], cb2),
        w_ds=_init(ks[11], (cb2, cb1, 1)), bn_ds=_init_bn(ks[12], cb2))
    p["exit1"] = dict(w1=_init(ks[13], (n, cb1, 1)), bn=_init_bn(ks[14], n),
                      w2=_init(ks[15], (n, n, 1)))
    p["exit2"] = dict(w1=_init(ks[16], (n, cb2, 1)), bn=_init_bn(ks[17], n),
                      w2=_init(ks[18], (n, n, 1)))
    p["fc"] = _init(ks[19], (n, cb2))  # nn.Linear weight shape (n_labels, C)
    return p


# ------------------------- pure-JAX reference (for checking) ------------------

def _conv1d_ref(x, w, stride=1, pad=0, dilation=1):
    return lax.conv_general_dilated(
        x, w, window_strides=(stride,), padding=[(pad, pad)],
        rhs_dilation=(dilation,), dimension_numbers=("NCH", "OIH", "NCH"),
        precision=lax.Precision.HIGHEST)


def _bn_ref(x, bn):
    scale = bn["gamma"] / jnp.sqrt(bn["var"] + BN_EPS)
    shift = bn["beta"] - bn["mean"] * scale
    return x * scale[None, :, None] + shift[None, :, None]


def reference_forward(params, x, config):
    clip = config["clipping_value"]
    n = config["n_labels"]
    B = x.shape[0]
    x = _conv1d_ref(x, params["conv1"], stride=config["conv1_stride"])
    exits = []
    for i, name in enumerate(["block1", "block2"], start=1):
        blk = params[name]
        stride = config[f"{name}_stride"]
        size = config[f"{name}_conv_size"]
        d = config["dilation"] ** i
        pad = d * (size // 2)
        y = _conv1d_ref(x, blk["w1"], stride=stride, pad=pad, dilation=d)
        y = jnp.clip(_bn_ref(y, blk["bn1"]), 0.0, clip)            # Hardtanh (act-reuse quirk)
        y = _conv1d_ref(y, blk["w2"], stride=1, pad=pad, dilation=d)
        y = _bn_ref(y, blk["bn2"])
        xd = jnp.maximum(_bn_ref(_conv1d_ref(x, blk["w_ds"], stride=stride), blk["bn_ds"]), 0.0)
        x = jnp.clip(y + xd, 0.0, clip)                            # post-residual Hardtanh
        ex = params[f"exit{i}"]
        e = jnp.maximum(_bn_ref(_conv1d_ref(x, ex["w1"]), ex["bn"]), 0.0)
        e = jnp.sum(e, axis=2, keepdims=True) / next_power_of2(e.shape[2])
        exits.append(_conv1d_ref(e, ex["w2"]).reshape(B, n))
    feat = jnp.sum(x, axis=2) / next_power_of2(x.shape[2])
    final = jnp.matmul(feat, params["fc"].T, precision=lax.Precision.HIGHEST)
    mask = jnp.ones((B, n), jnp.float32)
    glob = jnp.zeros((B, n), jnp.float32)
    for result, thr in zip(exits, config["earlyexit_thresholds"]):
        th = jnp.clip(result, -32.0, 31.9999389611)
        losses = jnp.sum(th, axis=1, keepdims=True) - n * jnp.max(th, axis=1, keepdims=True)
        cond = losses < thr
        masked = jnp.where(cond, result, 0.0)
        masked = jnp.where(mask > 0.0, masked, 0.0)
        mask = jnp.where(jnp.broadcast_to(cond, mask.shape), 0.0, mask)
        glob = glob + masked
    return glob + jnp.where(mask > 0.0, final, 0.0)


# ----------------------------------- main --------------------------------------

if __name__ == "__main__":
    key = jax.random.PRNGKey(0)
    kp, kx = jax.random.split(key)
    params = init_params(kp, CONFIG)
    x = jax.random.normal(kx, (2, CONFIG["height"], CONFIG["width"]), jnp.float32)

    fwd = jax.jit(functools.partial(branchy_tcresnet_forward, config=CONFIG))
    out = fwd(params, x)
    jax.block_until_ready(out)

    assert out.shape == (2, CONFIG["n_labels"])
    assert bool(jnp.all(jnp.isfinite(out)))

    ref = jax.jit(functools.partial(reference_forward, config=CONFIG))(params, x)
    assert bool(jnp.allclose(out, ref, rtol=2e-2, atol=2e-2)), (out, ref)

    print("KERNEL_OK")
</pallas_src>

<mosaic_0001>
module attributes {stable_mosaic.version = 11 : i64} {
  func.func @_fused_forward_kernel(%arg0: memref<32x4xf32, #tpu.memory_space<vmem>>, %arg1: memref<3x4x16xf32, #tpu.memory_space<vmem>>, %arg2: memref<3x28x32xf32, #tpu.memory_space<vmem>>, %arg3: memref<3x16x24xf32, #tpu.memory_space<vmem>>, %arg4: memref<3x14x28xf32, #tpu.memory_space<vmem>>, %arg5: memref<1x24xf32, #tpu.memory_space<vmem>>, %arg6: memref<3x24x24xf32, #tpu.memory_space<vmem>>, %arg7: memref<3x14x14xf32, #tpu.memory_space<vmem>>, %arg8: memref<1x24xf32, #tpu.memory_space<vmem>>, %arg9: memref<1x16x24xf32, #tpu.memory_space<vmem>>, %arg10: memref<1x14x28xf32, #tpu.memory_space<vmem>>, %arg11: memref<1x24xf32, #tpu.memory_space<vmem>>, %arg12: memref<24x10xf32, #tpu.memory_space<vmem>>, %arg13: memref<1x10xf32, #tpu.memory_space<vmem>>, %arg14: memref<10x10xf32, #tpu.memory_space<vmem>>, %arg15: memref<2x14xf32, #tpu.memory_space<vmem>>, %arg16: memref<3x24x32xf32, #tpu.memory_space<vmem>>, %arg17: memref<3x8x14xf32, #tpu.memory_space<vmem>>, %arg18: memref<1x32xf32, #tpu.memory_space<vmem>>, %arg19: memref<3x32x32xf32, #tpu.memory_space<vmem>>, %arg20: memref<3x8x8xf32, #tpu.memory_space<vmem>>, %arg21: memref<1x32xf32, #tpu.memory_space<vmem>>, %arg22: memref<1x24x32xf32, #tpu.memory_space<vmem>>, %arg23: memref<1x8x14xf32, #tpu.memory_space<vmem>>, %arg24: memref<1x32xf32, #tpu.memory_space<vmem>>, %arg25: memref<32x10xf32, #tpu.memory_space<vmem>>, %arg26: memref<1x10xf32, #tpu.memory_space<vmem>>, %arg27: memref<10x10xf32, #tpu.memory_space<vmem>>, %arg28: memref<2x8xf32, #tpu.memory_space<vmem>>, %arg29: memref<32x10xf32, #tpu.memory_space<vmem>>, %arg30: memref<2x10xf32, #tpu.memory_space<vmem>>) attributes {dimension_semantics = [], scalar_prefetch = 0 : i64, scratch_operands = 0 : i64, tpu.core_type = #tpu.core_type<tc>} {
    %c0 = arith.constant 0 : index
    %c0_0 = arith.constant 0 : index
    %0 = vector.load %arg0[%c0, %c0_0] : memref<32x4xf32, #tpu.memory_space<vmem>>, vector<32x4xf32>
    %c0_1 = arith.constant 0 : index
    %c0_2 = arith.constant 0 : index
    %c0_3 = arith.constant 0 : index
    %1 = vector.load %arg2[%c0_1, %c0_2, %c0_3] : memref<3x28x32xf32, #tpu.memory_space<vmem>>, vector<1x28x32xf32>
    %2 = vector.shape_cast %1 : vector<1x28x32xf32> to vector<28x32xf32>
    %c0_4 = arith.constant 0 : index
    %c0_5 = arith.constant 0 : index
    %c0_6 = arith.constant 0 : index
    %3 = vector.load %arg1[%c0_4, %c0_5, %c0_6] : memref<3x4x16xf32, #tpu.memory_space<vmem>>, vector<1x4x16xf32>
    %4 = vector.shape_cast %3 : vector<1x4x16xf32> to vector<4x16xf32>
    %cst = arith.constant dense<0.000000e+00> : vector<32x16xf32>
    %5 = tpu.matmul %0, %4, %cst {dimension_numbers = #tpu.dot_dimension_numbers<[1], [0], [0], [1], [0, 0, 1, 1], [], []>} : vector<32x4xf32>, vector<4x16xf32>, vector<32x16xf32> -> vector<32x16xf32>
    %cst_7 = arith.constant dense<0.000000e+00> : vector<28x16xf32>
    %6 = tpu.matmul %2, %5, %cst_7 {dimension_numbers = #tpu.dot_dimension_numbers<[1], [0], [0], [1], [0, 0, 1, 1], [], []>} : vector<28x32xf32>, vector<32x16xf32>, vector<28x16xf32> -> vector<28x16xf32>
    %c1 = arith.constant 1 : index
    %c0_8 = arith.constant 0 : index
    %c0_9 = arith.constant 0 : index
    %7 = vector.load %arg2[%c1, %c0_8, %c0_9] : memref<3x28x32xf32, #tpu.memory_space<vmem>>, vector<1x28x32xf32>
    %8 = vector.shape_cast %7 : vector<1x28x32xf32> to vector<28x32xf32>
    %c1_10 = arith.constant 1 : index
    %c0_11 = arith.constant 0 : index
    %c0_12 = arith.constant 0 : index
    %9 = vector.load %arg1[%c1_10, %c0_11, %c0_12] : memref<3x4x16xf32, #tpu.memory_space<vmem>>, vector<1x4x16xf32>
    %10 = vector.shape_cast %9 : vector<1x4x16xf32> to vector<4x16xf32>
    %cst_13 = arith.constant dense<0.000000e+00> : vector<32x16xf32>
    %11 = tpu.matmul %0, %10, %cst_13 {dimension_numbers = #tpu.dot_dimension_numbers<[1], [0], [0], [1], [0, 0, 1, 1], [], []>} : vector<32x4xf32>, vector<4x16xf32>, vector<32x16xf32> -> vector<32x16xf32>
    %cst_14 = arith.constant dense<0.000000e+00> : vector<28x16xf32>
    %12 = tpu.matmul %8, %11, %cst_14 {dimension_numbers = #tpu.dot_dimension_numbers<[1], [0], [0], [1], [0, 0, 1, 1], [], []>} : vector<28x32xf32>, vector<32x16xf32>, vector<28x16xf32> -> vector<28x16xf32>
    %13 = arith.addf %6, %12 : vector<28x16xf32>
    %c2 = arith.constant 2 : index
    %c0_15 = arith.constant 0 : index
    %c0_16 = arith.constant 0 : index
    %14 = vector.load %arg2[%c2, %c0_15, %c0_16] : memref<3x28x32xf32, #tpu.memory_space<vmem>>, vector<1x28x32xf32>
    %15 = vector.shape_cast %14 : vector<1x28x32xf32> to vector<28x32xf32>
    %c2_17 = arith.constant 2 : index
    %c0_18 = arith.constant 0 : index
    %c0_19 = arith.constant 0 : index
    %16 = vector.load %arg1[%c2_17, %c0_18, %c0_19] : memref<3x4x16xf32, #tpu.memory_space<vmem>>, vector<1x4x16xf32>
    %17 = vector.shape_cast %16 : vector<1x4x16xf32> to vector<4x16xf32>
    %cst_20 = arith.constant dense<0.000000e+00> : vector<32x16xf32>
    %18 = tpu.matmul %0, %17, %cst_20 {dimension_numbers = #tpu.dot_dimension_numbers<[1], [0], [0], [1], [0, 0, 1, 1], [], []>} : vector<32x4xf32>, vector<4x16xf32>, vector<32x16xf32> -> vector<32x16xf32>
    %cst_21 = arith.constant dense<0.000000e+00> : vector<28x16xf32>
    %19 = tpu.matmul %15, %18, %cst_21 {dimension_numbers = #tpu.dot_dimension_numbers<[1], [0], [0], [1], [0, 0, 1, 1], [], []>} : vector<28x32xf32>, vector<32x16xf32>, vector<28x16xf32> -> vector<28x16xf32>
    %20 = arith.addf %13, %19 : vector<28x16xf32>
    %c0_22 = arith.constant 0 : index
    %c0_23 = arith.constant 0 : index
    %c0_24 = arith.constant 0 : index
    %21 = vector.load %arg4[%c0_22, %c0_23, %c0_24] : memref<3x14x28xf32, #tpu.memory_space<vmem>>, vector<1x14x28xf32>
    %22 = vector.shape_cast %21 : vector<1x14x28xf32> to vector<14x28xf32>
    %c0_25 = arith.constant 0 : index
    %c0_26 = arith.constant 0 : index
    %c0_27 = arith.constant 0 : index
    %23 = vector.load %arg3[%c0_25, %c0_26, %c0_27] : memref<3x16x24xf32, #tpu.memory_space<vmem>>, vector<1x16x24xf32>
    %24 = vector.shape_cast %23 : vector<1x16x24xf32> to vector<16x24xf32>
    %cst_28 = arith.constant dense<0.000000e+00> : vector<28x24xf32>
    %25 = tpu.matmul %20, %24, %cst_28 {dimension_numbers = #tpu.dot_dimension_numbers<[1], [0], [0], [1], [0, 0, 1, 1], [], []>} : vector<28x16xf32>, vector<16x24xf32>, vector<28x24xf32> -> vector<28x24xf32>
    %cst_29 = arith.constant dense<0.000000e+00> : vector<14x24xf32>
    %26 = tpu.matmul %22, %25, %cst_29 {dimension_numbers = #tpu.dot_dimension_numbers<[1], [0], [0], [1], [0, 0, 1, 1], [], []>} : vector<14x28xf32>, vector<28x24xf32>, vector<14x24xf32> -> vector<14x24xf32>
    %c1_30 = arith.constant 1 : index
    %c0_31 = arith.constant 0 : index
    %c0_32 = arith.constant 0 : index
    %27 = vector.load %arg4[%c1_30, %c0_31, %c0_32] : memref<3x14x28xf32, #tpu.memory_space<vmem>>, vector<1x14x28xf32>
    %28 = vector.shape_cast %27 : vector<1x14x28xf32> to vector<14x28xf32>
    %c1_33 = arith.constant 1 : index
    %c0_34 = arith.constant 0 : index
    %c0_35 = arith.constant 0 : index
    %29 = vector.load %arg3[%c1_33, %c0_34, %c0_35] : memref<3x16x24xf32, #tpu.memory_space<vmem>>, vector<1x16x24xf32>
    %30 = vector.shape_cast %29 : vector<1x16x24xf32> to vector<16x24xf32>
    %cst_36 = arith.constant dense<0.000000e+00> : vector<28x24xf32>
    %31 = tpu.matmul %20, %30, %cst_36 {dimension_numbers = #tpu.dot_dimension_numbers<[1], [0], [0], [1], [0, 0, 1, 1], [], []>} : vector<28x16xf32>, vector<16x24xf32>, vector<28x24xf32> -> vector<28x24xf32>
    %cst_37 = arith.constant dense<0.000000e+00> : vector<14x24xf32>
    %32 = tpu.matmul %28, %31, %cst_37 {dimension_numbers = #tpu.dot_dimension_numbers<[1], [0], [0], [1], [0, 0, 1, 1], [], []>} : vector<14x28xf32>, vector<28x24xf32>, vector<14x24xf32> -> vector<14x24xf32>
    %33 = arith.addf %26, %32 : vector<14x24xf32>
    %c2_38 = arith.constant 2 : index
    %c0_39 = arith.constant 0 : index
    %c0_40 = arith.constant 0 : index
    %34 = vector.load %arg4[%c2_38, %c0_39, %c0_40] : memref<3x14x28xf32, #tpu.memory_space<vmem>>, vector<1x14x28xf32>
    %35 = vector.shape_cast %34 : vector<1x14x28xf32> to vector<14x28xf32>
    %c2_41 = arith.constant 2 : index
    %c0_42 = arith.constant 0 : index
    %c0_43 = arith.constant 0 : index
    %36 = vector.load %arg3[%c2_41, %c0_42, %c0_43] : memref<3x16x24xf32, #tpu.memory_space<vmem>>, vector<1x16x24xf32>
    %37 = vector.shape_cast %36 : vector<1x16x24xf32> to vector<16x24xf32>
    %cst_44 = arith.constant dense<0.000000e+00> : vector<28x24xf32>
    %38 = tpu.matmul %20, %37, %cst_44 {dimension_numbers = #tpu.dot_dimension_numbers<[1], [0], [0], [1], [0, 0, 1, 1], [], []>} : vector<28x16xf32>, vector<16x24xf32>, vector<28x24xf32> -> vector<28x24xf32>
    %cst_45 = arith.constant dense<0.000000e+00> : vector<14x24xf32>
    %39 = tpu.matmul %35, %38, %cst_45 {dimension_numbers = #tpu.dot_dimension_numbers<[1], [0], [0], [1], [0, 0, 1, 1], [], []>} : vector<14x28xf32>, vector<28x24xf32>, vector<14x24xf32> -> vector<14x24xf32>
    %40 = arith.addf %33, %39 : vector<14x24xf32>
    %c0_46 = arith.constant 0 : index
    %c0_47 = arith.constant 0 : index
    %41 = vector.load %arg5[%c0_46, %c0_47] : memref<1x24xf32, #tpu.memory_space<vmem>>, vector<1x24xf32>
    %42 = vector.broadcast %41 : vector<1x24xf32> to vector<14x24xf32>
    %43 = arith.addf %40, %42 : vector<14x24xf32>
    %cst_48 = arith.constant 0.000000e+00 : f32
    %cst_49 = arith.constant 8.000000e+00 : f32
    %44 = vector.broadcast %cst_48 : f32 to vector<14x24xf32>
    %45 = arith.maximumf %44, %43 : vector<14x24xf32>
    %46 = vector.broadcast %cst_49 : f32 to vector<14x24xf32>
    %47 = arith.minimumf %46, %45 : vector<14x24xf32>
    %c0_50 = arith.constant 0 : index
    %c0_51 = arith.constant 0 : index
    %c0_52 = arith.constant 0 : index
    %48 = vector.load %arg7[%c0_50, %c0_51, %c0_52] : memref<3x14x14xf32, #tpu.memory_space<vmem>>, vector<1x14x14xf32>
    %49 = vector.shape_cast %48 : vector<1x14x14xf32> to vector<14x14xf32>
    %c0_53 = arith.constant 0 : index
    %c0_54 = arith.constant 0 : index
    %c0_55 = arith.constant 0 : index
    %50 = vector.load %arg6[%c0_53, %c0_54, %c0_55] : memref<3x24x24xf32, #tpu.memory_space<vmem>>, vector<1x24x24xf32>
    %51 = vector.shape_cast %50 : vector<1x24x24xf32> to vector<24x24xf32>
    %cst_56 = arith.constant dense<0.000000e+00> : vector<14x24xf32>
    %52 = tpu.matmul %47, %51, %cst_56 {dimension_numbers = #tpu.dot_dimension_numbers<[1], [0], [0], [1], [0, 0, 1, 1], [], []>} : vector<14x24xf32>, vector<24x24xf32>, vector<14x24xf32> -> vector<14x24xf32>
    %cst_57 = arith.constant dense<0.000000e+00> : vector<14x24xf32>
    %53 = tpu.matmul %49, %52, %cst_57 {dimension_numbers = #tpu.dot_dimension_numbers<[1], [0], [0], [1], [0, 0, 1, 1], [], []>} : vector<14x14xf32>, vector<14x24xf32>, vector<14x24xf32> -> vector<14x24xf32>
    %c1_58 = arith.constant 1 : index
    %c0_59 = arith.constant 0 : index
    %c0_60 = arith.constant 0 : index
    %54 = vector.load %arg7[%c1_58, %c0_59, %c0_60] : memref<3x14x14xf32, #tpu.memory_space<vmem>>, vector<1x14x14xf32>
    %55 = vector.shape_cast %54 : vector<1x14x14xf32> to vector<14x14xf32>
    %c1_61 = arith.constant 1 : index
    %c0_62 = arith.constant 0 : index
    %c0_63 = arith.constant 0 : index
    %56 = vector.load %arg6[%c1_61, %c0_62, %c0_63] : memref<3x24x24xf32, #tpu.memory_space<vmem>>, vector<1x24x24xf32>
    %57 = vector.shape_cast %56 : vector<1x24x24xf32> to vector<24x24xf32>
    %cst_64 = arith.constant dense<0.000000e+00> : vector<14x24xf32>
    %58 = tpu.matmul %47, %57, %cst_64 {dimension_numbers = #tpu.dot_dimension_numbers<[1], [0], [0], [1], [0, 0, 1, 1], [], []>} : vector<14x24xf32>, vector<24x24xf32>, vector<14x24xf32> -> vector<14x24xf32>
    %cst_65 = arith.constant dense<0.000000e+00> : vector<14x24xf32>
    %59 = tpu.matmul %55, %58, %cst_65 {dimension_numbers = #tpu.dot_dimension_numbers<[1], [0], [0], [1], [0, 0, 1, 1], [], []>} : vector<14x14xf32>, vector<14x24xf32>, vector<14x24xf32> -> vector<14x24xf32>
    %60 = arith.addf %53, %59 : vector<14x24xf32>
    %c2_66 = arith.constant 2 : index
    %c0_67 = arith.constant 0 : index
    %c0_68 = arith.constant 0 : index
    %61 = vector.load %arg7[%c2_66, %c0_67, %c0_68] : memref<3x14x14xf32, #tpu.memory_space<vmem>>, vector<1x14x14xf32>
    %62 = vector.shape_cast %61 : vector<1x14x14xf32> to vector<14x14xf32>
    %c2_69 = arith.constant 2 : index
    %c0_70 = arith.constant 0 : index
    %c0_71 = arith.constant 0 : index
    %63 = vector.load %arg6[%c2_69, %c0_70, %c0_71] : memref<3x24x24xf32, #tpu.memory_space<vmem>>, vector<1x24x24xf32>
    %64 = vector.shape_cast %63 : vector<1x24x24xf32> to vector<24x24xf32>
    %cst_72 = arith.constant dense<0.000000e+00> : vector<14x24xf32>
    %65 = tpu.matmul %47, %64, %cst_72 {dimension_numbers = #tpu.dot_dimension_numbers<[1], [0], [0], [1], [0, 0, 1, 1], [], []>} : vector<14x24xf32>, vector<24x24xf32>, vector<14x24xf32> -> vector<14x24xf32>
    %cst_73 = arith.constant dense<0.000000e+00> : vector<14x24xf32>
    %66 = tpu.matmul %62, %65, %cst_73 {dimension_numbers = #tpu.dot_dimension_numbers<[1], [0], [0], [1], [0, 0, 1, 1], [], []>} : vector<14x14xf32>, vector<14x24xf32>, vector<14x24xf32> -> vector<14x24xf32>
    %67 = arith.addf %60, %66 : vector<14x24xf32>
    %c0_74 = arith.constant 0 : index
    %c0_75 = arith.constant 0 : index
    %68 = vector.load %arg8[%c0_74, %c0_75] : memref<1x24xf32, #tpu.memory_space<vmem>>, vector<1x24xf32>
    %69 = vector.broadcast %68 : vector<1x24xf32> to vector<14x24xf32>
    %70 = arith.addf %67, %69 : vector<14x24xf32>
    %c0_76 = arith.constant 0 : index
    %c0_77 = arith.constant 0 : index
    %c0_78 = arith.constant 0 : index
    %71 = vector.load %arg10[%c0_76, %c0_77, %c0_78] : memref<1x14x28xf32, #tpu.memory_space<vmem>>, vector<1x14x28xf32>
    %72 = vector.shape_cast %71 : vector<1x14x28xf32> to vector<14x28xf32>
    %c0_79 = arith.constant 0 : index
    %c0_80 = arith.constant 0 : index
    %c0_81 = arith.constant 0 : index
    %73 = vector.load %arg9[%c0_79, %c0_80, %c0_81] : memref<1x16x24xf32, #tpu.memory_space<vmem>>, vector<1x16x24xf32>
    %74 = vector.shape_cast %73 : vector<1x16x24xf32> to vector<16x24xf32>
    %cst_82 = arith.constant dense<0.000000e+00> : vector<28x24xf32>
    %75 = tpu.matmul %20, %74, %cst_82 {dimension_numbers = #tpu.dot_dimension_numbers<[1], [0], [0], [1], [0, 0, 1, 1], [], []>} : vector<28x16xf32>, vector<16x24xf32>, vector<28x24xf32> -> vector<28x24xf32>
    %cst_83 = arith.constant dense<0.000000e+00> : vector<14x24xf32>
    %76 = tpu.matmul %72, %75, %cst_83 {dimension_numbers = #tpu.dot_dimension_numbers<[1], [0], [0], [1], [0, 0, 1, 1], [], []>} : vector<14x28xf32>, vector<28x24xf32>, vector<14x24xf32> -> vector<14x24xf32>
    %c0_84 = arith.constant 0 : index
    %c0_85 = arith.constant 0 : index
    %77 = vector.load %arg11[%c0_84, %c0_85] : memref<1x24xf32, #tpu.memory_space<vmem>>, vector<1x24xf32>
    %78 = vector.broadcast %77 : vector<1x24xf32> to vector<14x24xf32>
    %79 = arith.addf %76, %78 : vector<14x24xf32>
    %cst_86 = arith.constant 0.000000e+00 : f32
    %80 = vector.broadcast %cst_86 : f32 to vector<14x24xf32>
    %81 = arith.maximumf %79, %80 : vector<14x24xf32>
    %82 = arith.addf %70, %81 : vector<14x24xf32>
    %cst_87 = arith.constant 0.000000e+00 : f32
    %cst_88 = arith.constant 8.000000e+00 : f32
    %83 = vector.broadcast %cst_87 : f32 to vector<14x24xf32>
    %84 = arith.maximumf %83, %82 : vector<14x24xf32>
    %85 = vector.broadcast %cst_88 : f32 to vector<14x24xf32>
    %86 = arith.minimumf %85, %84 : vector<14x24xf32>
    %c0_89 = arith.constant 0 : index
    %c0_90 = arith.constant 0 : index
    %87 = vector.load %arg12[%c0_89, %c0_90] : memref<24x10xf32, #tpu.memory_space<vmem>>, vector<24x10xf32>
    %cst_91 = arith.constant dense<0.000000e+00> : vector<14x10xf32>
    %88 = tpu.matmul %86, %87, %cst_91 {dimension_numbers = #tpu.dot_dimension_numbers<[1], [0], [0], [1], [0, 0, 1, 1], [], []>} : vector<14x24xf32>, vector<24x10xf32>, vector<14x10xf32> -> vector<14x10xf32>
    %c0_92 = arith.constant 0 : index
    %c0_93 = arith.constant 0 : index
    %89 = vector.load %arg13[%c0_92, %c0_93] : memref<1x10xf32, #tpu.memory_space<vmem>>, vector<1x10xf32>
    %90 = vector.broadcast %89 : vector<1x10xf32> to vector<14x10xf32>
    %91 = arith.addf %88, %90 : vector<14x10xf32>
    %cst_94 = arith.constant 0.000000e+00 : f32
    %92 = vector.broadcast %cst_94 : f32 to vector<14x10xf32>
    %93 = arith.maximumf %91, %92 : vector<14x10xf32>
    %c0_95 = arith.constant 0 : index
    %c0_96 = arith.constant 0 : index
    %94 = vector.load %arg15[%c0_95, %c0_96] : memref<2x14xf32, #tpu.memory_space<vmem>>, vector<2x14xf32>
    %cst_97 = arith.constant dense<0.000000e+00> : vector<2x10xf32>
    %95 = tpu.matmul %94, %93, %cst_97 {dimension_numbers = #tpu.dot_dimension_numbers<[1], [0], [0], [1], [0, 0, 1, 1], [], []>} : vector<2x14xf32>, vector<14x10xf32>, vector<2x10xf32> -> vector<2x10xf32>
    %c0_98 = arith.constant 0 : index
    %c0_99 = arith.constant 0 : index
    %96 = vector.load %arg14[%c0_98, %c0_99] : memref<10x10xf32, #tpu.memory_space<vmem>>, vector<10x10xf32>
    %cst_100 = arith.constant dense<0.000000e+00> : vector<2x10xf32>
    %97 = tpu.matmul %95, %96, %cst_100 {dimension_numbers = #tpu.dot_dimension_numbers<[1], [0], [0], [1], [0, 0, 1, 1], [], []>} : vector<2x10xf32>, vector<10x10xf32>, vector<2x10xf32> -> vector<2x10xf32>
    %c0_101 = arith.constant 0 : index
    %c0_102 = arith.constant 0 : index
    %c0_103 = arith.constant 0 : index
    %98 = vector.load %arg17[%c0_101, %c0_102, %c0_103] : memref<3x8x14xf32, #tpu.memory_space<vmem>>, vector<1x8x14xf32>
    %99 = vector.shape_cast %98 : vector<1x8x14xf32> to vector<8x14xf32>
    %c0_104 = arith.constant 0 : index
    %c0_105 = arith.constant 0 : index
    %c0_106 = arith.constant 0 : index
    %100 = vector.load %arg16[%c0_104, %c0_105, %c0_106] : memref<3x24x32xf32, #tpu.memory_space<vmem>>, vector<1x24x32xf32>
    %101 = vector.shape_cast %100 : vector<1x24x32xf32> to vector<24x32xf32>
    %cst_107 = arith.constant dense<0.000000e+00> : vector<14x32xf32>
    %102 = tpu.matmul %86, %101, %cst_107 {dimension_numbers = #tpu.dot_dimension_numbers<[1], [0], [0], [1], [0, 0, 1, 1], [], []>} : vector<14x24xf32>, vector<24x32xf32>, vector<14x32xf32> -> vector<14x32xf32>
    %cst_108 = arith.constant dense<0.000000e+00> : vector<8x32xf32>
    %103 = tpu.matmul %99, %102, %cst_108 {dimension_numbers = #tpu.dot_dimension_numbers<[1], [0], [0], [1], [0, 0, 1, 1], [], []>} : vector<8x14xf32>, vector<14x32xf32>, vector<8x32xf32> -> vector<8x32xf32>
    %c1_109 = arith.constant 1 : index
    %c0_110 = arith.constant 0 : index
    %c0_111 = arith.constant 0 : index
    %104 = vector.load %arg17[%c1_109, %c0_110, %c0_111] : memref<3x8x14xf32, #tpu.memory_space<vmem>>, vector<1x8x14xf32>
    %105 = vector.shape_cast %104 : vector<1x8x14xf32> to vector<8x14xf32>
    %c1_112 = arith.constant 1 : index
    %c0_113 = arith.constant 0 : index
    %c0_114 = arith.constant 0 : index
    %106 = vector.load %arg16[%c1_112, %c0_113, %c0_114] : memref<3x24x32xf32, #tpu.memory_space<vmem>>, vector<1x24x32xf32>
    %107 = vector.shape_cast %106 : vector<1x24x32xf32> to vector<24x32xf32>
    %cst_115 = arith.constant dense<0.000000e+00> : vector<14x32xf32>
    %108 = tpu.matmul %86, %107, %cst_115 {dimension_numbers = #tpu.dot_dimension_numbers<[1], [0], [0], [1], [0, 0, 1, 1], [], []>} : vector<14x24xf32>, vector<24x32xf32>, vector<14x32xf32> -> vector<14x32xf32>
    %cst_116 = arith.constant dense<0.000000e+00> : vector<8x32xf32>
    %109 = tpu.matmul %105, %108, %cst_116 {dimension_numbers = #tpu.dot_dimension_numbers<[1], [0], [0], [1], [0, 0, 1, 1], [], []>} : vector<8x14xf32>, vector<14x32xf32>, vector<8x32xf32> -> vector<8x32xf32>
    %110 = arith.addf %103, %109 : vector<8x32xf32>
    %c2_117 = arith.constant 2 : index
    %c0_118 = arith.constant 0 : index
    %c0_119 = arith.constant 0 : index
    %111 = vector.load %arg17[%c2_117, %c0_118, %c0_119] : memref<3x8x14xf32, #tpu.memory_space<vmem>>, vector<1x8x14xf32>
    %112 = vector.shape_cast %111 : vector<1x8x14xf32> to vector<8x14xf32>
    %c2_120 = arith.constant 2 : index
    %c0_121 = arith.constant 0 : index
    %c0_122 = arith.constant 0 : index
    %113 = vector.load %arg16[%c2_120, %c0_121, %c0_122] : memref<3x24x32xf32, #tpu.memory_space<vmem>>, vector<1x24x32xf32>
    %114 = vector.shape_cast %113 : vector<1x24x32xf32> to vector<24x32xf32>
    %cst_123 = arith.constant dense<0.000000e+00> : vector<14x32xf32>
    %115 = tpu.matmul %86, %114, %cst_123 {dimension_numbers = #tpu.dot_dimension_numbers<[1], [0], [0], [1], [0, 0, 1, 1], [], []>} : vector<14x24xf32>, vector<24x32xf32>, vector<14x32xf32> -> vector<14x32xf32>
    %cst_124 = arith.constant dense<0.000000e+00> : vector<8x32xf32>
    %116 = tpu.matmul %112, %115, %cst_124 {dimension_numbers = #tpu.dot_dimension_numbers<[1], [0], [0], [1], [0, 0, 1, 1], [], []>} : vector<8x14xf32>, vector<14x32xf32>, vector<8x32xf32> -> vector<8x32xf32>
    %117 = arith.addf %110, %116 : vector<8x32xf32>
    %c0_125 = arith.constant 0 : index
    %c0_126 = arith.constant 0 : index
    %118 = vector.load %arg18[%c0_125, %c0_126] : memref<1x32xf32, #tpu.memory_space<vmem>>, vector<1x32xf32>
    %119 = vector.broadcast %118 : vector<1x32xf32> to vector<8x32xf32>
    %120 = arith.addf %117, %119 : vector<8x32xf32>
    %cst_127 = arith.constant 0.000000e+00 : f32
    %cst_128 = arith.constant 8.000000e+00 : f32
    %121 = vector.broadcast %cst_127 : f32 to vector<8x32xf32>
    %122 = arith.maximumf %121, %120 : vector<8x32xf32>
    %123 = vector.broadcast %cst_128 : f32 to vector<8x32xf32>
    %124 = arith.minimumf %123, %122 : vector<8x32xf32>
    %c0_129 = arith.constant 0 : index
    %c0_130 = arith.constant 0 : index
    %c0_131 = arith.constant 0 : index
    %125 = vector.load %arg20[%c0_129, %c0_130, %c0_131] : memref<3x8x8xf32, #tpu.memory_space<vmem>>, vector<1x8x8xf32>
    %126 = vector.shape_cast %125 : vector<1x8x8xf32> to vector<8x8xf32>
    %c0_132 = arith.constant 0 : index
    %c0_133 = arith.constant 0 : index
    %c0_134 = arith.constant 0 : index
    %127 = vector.load %arg19[%c0_132, %c0_133, %c0_134] : memref<3x32x32xf32, #tpu.memory_space<vmem>>, vector<1x32x32xf32>
    %128 = vector.shape_cast %127 : vector<1x32x32xf32> to vector<32x32xf32>
    %cst_135 = arith.constant dense<0.000000e+00> : vector<8x32xf32>
    %129 = tpu.matmul %124, %128, %cst_135 {dimension_numbers = #tpu.dot_dimension_numbers<[1], [0], [0], [1], [0, 0, 1, 1], [], []>} : vector<8x32xf32>, vector<32x32xf32>, vector<8x32xf32> -> vector<8x32xf32>
    %cst_136 = arith.constant dense<0.000000e+00> : vector<8x32xf32>
    %130 = tpu.matmul %126, %129, %cst_136 {dimension_numbers = #tpu.dot_dimension_numbers<[1], [0], [0], [1], [0, 0, 1, 1], [], []>} : vector<8x8xf32>, vector<8x32xf32>, vector<8x32xf32> -> vector<8x32xf32>
    %c1_137 = arith.constant 1 : index
    %c0_138 = arith.constant 0 : index
    %c0_139 = arith.constant 0 : index
    %131 = vector.load %arg20[%c1_137, %c0_138, %c0_139] : memref<3x8x8xf32, #tpu.memory_space<vmem>>, vector<1x8x8xf32>
    %132 = vector.shape_cast %131 : vector<1x8x8xf32> to vector<8x8xf32>
    %c1_140 = arith.constant 1 : index
    %c0_141 = arith.constant 0 : index
    %c0_142 = arith.constant 0 : index
    %133 = vector.load %arg19[%c1_140, %c0_141, %c0_142] : memref<3x32x32xf32, #tpu.memory_space<vmem>>, vector<1x32x32xf32>
    %134 = vector.shape_cast %133 : vector<1x32x32xf32> to vector<32x32xf32>
    %cst_143 = arith.constant dense<0.000000e+00> : vector<8x32xf32>
    %135 = tpu.matmul %124, %134, %cst_143 {dimension_numbers = #tpu.dot_dimension_numbers<[1], [0], [0], [1], [0, 0, 1, 1], [], []>} : vector<8x32xf32>, vector<32x32xf32>, vector<8x32xf32> -> vector<8x32xf32>
    %cst_144 = arith.constant dense<0.000000e+00> : vector<8x32xf32>
    %136 = tpu.matmul %132, %135, %cst_144 {dimension_numbers = #tpu.dot_dimension_numbers<[1], [0], [0], [1], [0, 0, 1, 1], [], []>} : vector<8x8xf32>, vector<8x32xf32>, vector<8x32xf32> -> vector<8x32xf32>
    %137 = arith.addf %130, %136 : vector<8x32xf32>
    %c2_145 = arith.constant 2 : index
    %c0_146 = arith.constant 0 : index
    %c0_147 = arith.constant 0 : index
    %138 = vector.load %arg20[%c2_145, %c0_146, %c0_147] : memref<3x8x8xf32, #tpu.memory_space<vmem>>, vector<1x8x8xf32>
    %139 = vector.shape_cast %138 : vector<1x8x8xf32> to vector<8x8xf32>
    %c2_148 = arith.constant 2 : index
    %c0_149 = arith.constant 0 : index
    %c0_150 = arith.constant 0 : index
    %140 = vector.load %arg19[%c2_148, %c0_149, %c0_150] : memref<3x32x32xf32, #tpu.memory_space<vmem>>, vector<1x32x32xf32>
    %141 = vector.shape_cast %140 : vector<1x32x32xf32> to vector<32x32xf32>
    %cst_151 = arith.constant dense<0.000000e+00> : vector<8x32xf32>
    %142 = tpu.matmul %124, %141, %cst_151 {dimension_numbers = #tpu.dot_dimension_numbers<[1], [0], [0], [1], [0, 0, 1, 1], [], []>} : vector<8x32xf32>, vector<32x32xf32>, vector<8x32xf32> -> vector<8x32xf32>
    %cst_152 = arith.constant dense<0.000000e+00> : vector<8x32xf32>
    %143 = tpu.matmul %139, %142, %cst_152 {dimension_numbers = #tpu.dot_dimension_numbers<[1], [0], [0], [1], [0, 0, 1, 1], [], []>} : vector<8x8xf32>, vector<8x32xf32>, vector<8x32xf32> -> vector<8x32xf32>
    %144 = arith.addf %137, %143 : vector<8x32xf32>
    %c0_153 = arith.constant 0 : index
    %c0_154 = arith.constant 0 : index
    %145 = vector.load %arg21[%c0_153, %c0_154] : memref<1x32xf32, #tpu.memory_space<vmem>>, vector<1x32xf32>
    %146 = vector.broadcast %145 : vector<1x32xf32> to vector<8x32xf32>
    %147 = arith.addf %144, %146 : vector<8x32xf32>
    %c0_155 = arith.constant 0 : index
    %c0_156 = arith.constant 0 : index
    %c0_157 = arith.constant 0 : index
    %148 = vector.load %arg23[%c0_155, %c0_156, %c0_157] : memref<1x8x14xf32, #tpu.memory_space<vmem>>, vector<1x8x14xf32>
    %149 = vector.shape_cast %148 : vector<1x8x14xf32> to vector<8x14xf32>
    %c0_158 = arith.constant 0 : index
    %c0_159 = arith.constant 0 : index
    %c0_160 = arith.constant 0 : index
    %150 = vector.load %arg22[%c0_158, %c0_159, %c0_160] : memref<1x24x32xf32, #tpu.memory_space<vmem>>, vector<1x24x32xf32>
    %151 = vector.shape_cast %150 : vector<1x24x32xf32> to vector<24x32xf32>
    %cst_161 = arith.constant dense<0.000000e+00> : vector<14x32xf32>
    %152 = tpu.matmul %86, %151, %cst_161 {dimension_numbers = #tpu.dot_dimension_numbers<[1], [0], [0], [1], [0, 0, 1, 1], [], []>} : vector<14x24xf32>, vector<24x32xf32>, vector<14x32xf32> -> vector<14x32xf32>
    %cst_162 = arith.constant dense<0.000000e+00> : vector<8x32xf32>
    %153 = tpu.matmul %149, %152, %cst_162 {dimension_numbers = #tpu.dot_dimension_numbers<[1], [0], [0], [1], [0, 0, 1, 1], [], []>} : vector<8x14xf32>, vector<14x32xf32>, vector<8x32xf32> -> vector<8x32xf32>
    %c0_163 = arith.constant 0 : index
    %c0_164 = arith.constant 0 : index
    %154 = vector.load %arg24[%c0_163, %c0_164] : memref<1x32xf32, #tpu.memory_space<vmem>>, vector<1x32xf32>
    %155 = vector.broadcast %154 : vector<1x32xf32> to vector<8x32xf32>
    %156 = arith.addf %153, %155 : vector<8x32xf32>
    %cst_165 = arith.constant 0.000000e+00 : f32
    %157 = vector.broadcast %cst_165 : f32 to vector<8x32xf32>
    %158 = arith.maximumf %156, %157 : vector<8x32xf32>
    %159 = arith.addf %147, %158 : vector<8x32xf32>
    %cst_166 = arith.constant 0.000000e+00 : f32
    %cst_167 = arith.constant 8.000000e+00 : f32
    %160 = vector.broadcast %cst_166 : f32 to vector<8x32xf32>
    %161 = arith.maximumf %160, %159 : vector<8x32xf32>
    %162 = vector.broadcast %cst_167 : f32 to vector<8x32xf32>
    %163 = arith.minimumf %162, %161 : vector<8x32xf32>
    %c0_168 = arith.constant 0 : index
    %c0_169 = arith.constant 0 : index
    %164 = vector.load %arg25[%c0_168, %c0_169] : memref<32x10xf32, #tpu.memory_space<vmem>>, vector<32x10xf32>
    %cst_170 = arith.constant dense<0.000000e+00> : vector<8x10xf32>
    %165 = tpu.matmul %163, %164, %cst_170 {dimension_numbers = #tpu.dot_dimension_numbers<[1], [0], [0], [1], [0, 0, 1, 1], [], []>} : vector<8x32xf32>, vector<32x10xf32>, vector<8x10xf32> -> vector<8x10xf32>
    %c0_171 = arith.constant 0 : index
    %c0_172 = arith.constant 0 : index
    %166 = vector.load %arg26[%c0_171, %c0_172] : memref<1x10xf32, #tpu.memory_space<vmem>>, vector<1x10xf32>
    %167 = vector.broadcast %166 : vector<1x10xf32> to vector<8x10xf32>
    %168 = arith.addf %165, %167 : vector<8x10xf32>
    %cst_173 = arith.constant 0.000000e+00 : f32
    %169 = vector.broadcast %cst_173 : f32 to vector<8x10xf32>
    %170 = arith.maximumf %168, %169 : vector<8x10xf32>
    %c0_174 = arith.constant 0 : index
    %c0_175 = arith.constant 0 : index
    %171 = vector.load %arg28[%c0_174, %c0_175] : memref<2x8xf32, #tpu.memory_space<vmem>>, vector<2x8xf32>
    %cst_176 = arith.constant dense<0.000000e+00> : vector<2x10xf32>
    %172 = tpu.matmul %171, %170, %cst_176 {dimension_numbers = #tpu.dot_dimension_numbers<[1], [0], [0], [1], [0, 0, 1, 1], [], []>} : vector<2x8xf32>, vector<8x10xf32>, vector<2x10xf32> -> vector<2x10xf32>
    %c0_177 = arith.constant 0 : index
    %c0_178 = arith.constant 0 : index
    %173 = vector.load %arg27[%c0_177, %c0_178] : memref<10x10xf32, #tpu.memory_space<vmem>>, vector<10x10xf32>
    %cst_179 = arith.constant dense<0.000000e+00> : vector<2x10xf32>
    %174 = tpu.matmul %172, %173, %cst_179 {dimension_numbers = #tpu.dot_dimension_numbers<[1], [0], [0], [1], [0, 0, 1, 1], [], []>} : vector<2x10xf32>, vector<10x10xf32>, vector<2x10xf32> -> vector<2x10xf32>
    %c0_180 = arith.constant 0 : index
    %c0_181 = arith.constant 0 : index
    %175 = vector.load %arg28[%c0_180, %c0_181] : memref<2x8xf32, #tpu.memory_space<vmem>>, vector<2x8xf32>
    %cst_182 = arith.constant dense<0.000000e+00> : vector<2x32xf32>
    %176 = tpu.matmul %175, %163, %cst_182 {dimension_numbers = #tpu.dot_dimension_numbers<[1], [0], [0], [1], [0, 0, 1, 1], [], []>} : vector<2x8xf32>, vector<8x32xf32>, vector<2x32xf32> -> vector<2x32xf32>
    %c0_183 = arith.constant 0 : index
    %c0_184 = arith.constant 0 : index
    %177 = vector.load %arg29[%c0_183, %c0_184] : memref<32x10xf32, #tpu.memory_space<vmem>>, vector<32x10xf32>
    %cst_185 = arith.constant dense<0.000000e+00> : vector<2x10xf32>
    %178 = tpu.matmul %176, %177, %cst_185 {dimension_numbers = #tpu.dot_dimension_numbers<[1], [0], [0], [1], [0, 0, 1, 1], [], []>} : vector<2x32xf32>, vector<32x10xf32>, vector<2x10xf32> -> vector<2x10xf32>
    %cst_186 = arith.constant 1.000000e+00 : f32
    %179 = vector.broadcast %cst_186 : f32 to vector<2x10xf32>
    %cst_187 = arith.constant 0.000000e+00 : f32
    %180 = vector.broadcast %cst_187 : f32 to vector<2x10xf32>
    %cst_188 = arith.constant -3.200000e+01 : f32
    %cst_189 = arith.constant 31.999939 : f32
    %181 = vector.broadcast %cst_188 : f32 to vector<2x10xf32>
    %182 = arith.maximumf %181, %97 : vector<2x10xf32>
    %183 = vector.broadcast %cst_189 : f32 to vector<2x10xf32>
    %184 = arith.minimumf %183, %182 : vector<2x10xf32>
    %cst_190 = arith.constant dense<0.000000e+00> : vector<2xf32>
    %185 = vector.multi_reduction <add>, %184, %cst_190 [1] : vector<2x10xf32> to vector<2xf32>
    %186 = vector.shape_cast %185 : vector<2xf32> to vector<2x1xf32>
    %cst_191 = arith.constant dense<0xFF800000> : vector<2xf32>
    %187 = vector.multi_reduction <maximumf>, %184, %cst_191 [1] : vector<2x10xf32> to vector<2xf32>
    %188 = vector.shape_cast %187 : vector<2xf32> to vector<2x1xf32>
    %cst_192 = arith.constant 1.000000e+01 : f32
    %189 = vector.broadcast %cst_192 : f32 to vector<2x1xf32>
    %190 = arith.mulf %189, %188 : vector<2x1xf32>
    %191 = arith.subf %186, %190 : vector<2x1xf32>
    %cst_193 = arith.constant -8.000000e+00 : f32
    %192 = vector.broadcast %cst_193 : f32 to vector<2x1xf32>
    %193 = arith.cmpf olt, %191, %192 : vector<2x1xf32>
    %cst_194 = arith.constant 0.000000e+00 : f32
    %194 = vector.shape_cast %193 : vector<2x1xi1> to vector<2x1xi1>
    %195 = vector.broadcast %194 : vector<2x1xi1> to vector<2x10xi1>
    %196 = vector.broadcast %cst_194 : f32 to vector<2x10xf32>
    %197 = arith.select %195, %97, %196 : vector<2x10xi1>, vector<2x10xf32>
    %cst_195 = arith.constant 0.000000e+00 : f32
    %198 = vector.broadcast %cst_195 : f32 to vector<2x10xf32>
    %199 = arith.cmpf ogt, %179, %198 : vector<2x10xf32>
    %cst_196 = arith.constant 0.000000e+00 : f32
    %200 = vector.broadcast %cst_196 : f32 to vector<2x10xf32>
    %201 = arith.select %199, %197, %200 : vector<2x10xi1>, vector<2x10xf32>
    %202 = vector.shape_cast %193 : vector<2x1xi1> to vector<2x1xi1>
    %203 = vector.broadcast %202 : vector<2x1xi1> to vector<2x10xi1>
    %cst_197 = arith.constant 0.000000e+00 : f32
    %204 = vector.broadcast %cst_197 : f32 to vector<2x10xf32>
    %205 = arith.select %203, %204, %179 : vector<2x10xi1>, vector<2x10xf32>
    %206 = arith.addf %180, %201 : vector<2x10xf32>
    %cst_198 = arith.constant -3.200000e+01 : f32
    %cst_199 = arith.constant 31.999939 : f32
    %207 = vector.broadcast %cst_198 : f32 to vector<2x10xf32>
    %208 = arith.maximumf %207, %174 : vector<2x10xf32>
    %209 = vector.broadcast %cst_199 : f32 to vector<2x10xf32>
    %210 = arith.minimumf %209, %208 : vector<2x10xf32>
    %cst_200 = arith.constant dense<0.000000e+00> : vector<2xf32>
    %211 = vector.multi_reduction <add>, %210, %cst_200 [1] : vector<2x10xf32> to vector<2xf32>
    %212 = vector.shape_cast %211 : vector<2xf32> to vector<2x1xf32>
    %cst_201 = arith.constant dense<0xFF800000> : vector<2xf32>
    %213 = vector.multi_reduction <maximumf>, %210, %cst_201 [1] : vector<2x10xf32> to vector<2xf32>
    %214 = vector.shape_cast %213 : vector<2xf32> to vector<2x1xf32>
    %cst_202 = arith.constant 1.000000e+01 : f32
    %215 = vector.broadcast %cst_202 : f32 to vector<2x1xf32>
    %216 = arith.mulf %215, %214 : vector<2x1xf32>
    %217 = arith.subf %212, %216 : vector<2x1xf32>
    %cst_203 = arith.constant -6.000000e+00 : f32
    %218 = vector.broadcast %cst_203 : f32 to vector<2x1xf32>
    %219 = arith.cmpf olt, %217, %218 : vector<2x1xf32>
    %cst_204 = arith.constant 0.000000e+00 : f32
    %220 = vector.shape_cast %219 : vector<2x1xi1> to vector<2x1xi1>
    %221 = vector.broadcast %220 : vector<2x1xi1> to vector<2x10xi1>
    %222 = vector.broadcast %cst_204 : f32 to vector<2x10xf32>
    %223 = arith.select %221, %174, %222 : vector<2x10xi1>, vector<2x10xf32>
    %cst_205 = arith.constant 0.000000e+00 : f32
    %224 = vector.broadcast %cst_205 : f32 to vector<2x10xf32>
    %225 = arith.cmpf ogt, %205, %224 : vector<2x10xf32>
    %cst_206 = arith.constant 0.000000e+00 : f32
    %226 = vector.broadcast %cst_206 : f32 to vector<2x10xf32>
    %227 = arith.select %225, %223, %226 : vector<2x10xi1>, vector<2x10xf32>
    %228 = vector.shape_cast %219 : vector<2x1xi1> to vector<2x1xi1>
    %229 = vector.broadcast %228 : vector<2x1xi1> to vector<2x10xi1>
    %cst_207 = arith.constant 0.000000e+00 : f32
    %230 = vector.broadcast %cst_207 : f32 to vector<2x10xf32>
    %231 = arith.select %229, %230, %205 : vector<2x10xi1>, vector<2x10xf32>
    %232 = arith.addf %206, %227 : vector<2x10xf32>
    %cst_208 = arith.constant 0.000000e+00 : f32
    %233 = vector.broadcast %cst_208 : f32 to vector<2x10xf32>
    %234 = arith.cmpf ogt, %231, %233 : vector<2x10xf32>
    %cst_209 = arith.constant 0.000000e+00 : f32
    %235 = vector.broadcast %cst_209 : f32 to vector<2x10xf32>
    %236 = arith.select %234, %178, %235 : vector<2x10xi1>, vector<2x10xf32>
    %237 = arith.addf %232, %236 : vector<2x10xf32>
    %c0_210 = arith.constant 0 : index
    %c0_211 = arith.constant 0 : index
    %238 = vector.load %arg30[%c0_210, %c0_211] : memref<2x10xf32, #tpu.memory_space<vmem>>, vector<2x10xf32>
    tpu.vector_store %arg30[%c0_210, %c0_211], %237 {strides = array<i32>} : memref<2x10xf32, #tpu.memory_space<vmem>>, vector<2x10xf32>,
    return
  }
}

</mosaic_0001>

<bundles_post_ra>
// kernel: branchy_tcresnet_forward.1
= control target key start
LH: loop header
LB: loop body
LE: loop exit
PB: predicated region body
PF: predicated region fallthrough
CT: control target
= control target key end

     0   :  { %s4587_s6 = smov 1   ;;  %s4588_s10 = smov 2   ;;  %s5130_s0 = inlined_call_operand.smem [shape: u32[31], index: -1, kind: input, shape index: {}] }
   0x1   :  { %s4629_s5 = sld [smem:[%s5130_s0]]   ;;  %s4589_s14 = smov 3  }
   0x2   :  { %s4634_s9 = sld [smem:[%s5130_s0 + %s4587_s6]]   ;;  %s4590_s18 = smov 4  }
   0x3   :  { %s4639_s13 = sld [smem:[%s5130_s0 + %s4588_s10]]   ;;  %s4591_s22 = smov 5  }
   0x4   :  { %s4644_s17 = sld [smem:[%s5130_s0 + %s4589_s14]]   ;;  %s4592_s26 = smov 6  }
   0x5   :  { %s4649_s21 = sld [smem:[%s5130_s0 + %s4590_s18]]   ;;  %s4593_s30 = smov 7  }
   0x6   :  { %s4654_s25 = sld [smem:[%s5130_s0 + %s4591_s22]]   ;;  %s4594_s4 = smov 8  }
   0x7   :  { %s4659_s29 = sld [smem:[%s5130_s0 + %s4592_s26]]   ;;  %s4595_s10 = smov 9  }
   0x8   :  { %s4664_s3 = sld [smem:[%s5130_s0 + %s4593_s30]]   ;;  %s4596_s15 = smov 10  }
   0x9   :  { %s4669_s8 = sld [smem:[%s5130_s0 + %s4594_s4]]   ;;  %s4597_s20 = smov 11  }
   0xa   :  { %s4674_s14 = sld [smem:[%s5130_s0 + %s4595_s10]]   ;;  %s4598_s26 = smov 12  }
   0xb   :  { %s4679_s19 = sld [smem:[%s5130_s0 + %s4596_s15]]   ;;  %s4599_s1 = smov 13  }
   0xc   :  { %s4684_s24 = sld [smem:[%s5130_s0 + %s4597_s20]]   ;;  %s4600_s7 = smov 14  }
   0xd   :  { %s4689_s30 = sld [smem:[%s5130_s0 + %s4598_s26]]   ;;  %s4601_s15 = smov 15  }
   0xe   :  { %s4694_s6 = sld [smem:[%s5130_s0 + %s4599_s1]]   ;;  %s4602_s22 = smov 16  }
   0xf   :  { %s4699_s12 = sld [smem:[%s5130_s0 + %s4600_s7]]   ;;  %s4603_s28 = smov 17  }
  0x10   :  { %s4704_s20 = sld [smem:[%s5130_s0 + %s4601_s15]]   ;;  %s4604_s7 = smov 18  }
  0x11   :  { %s4709_s27 = sld [smem:[%s5130_s0 + %s4602_s22]]   ;;  %s4605_s15 = smov 19  }
  0x12   :  { %s4714_s4 = sld [smem:[%s5130_s0 + %s4603_s28]]   ;;  %s4606_s22 = smov 20  }
  0x13   :  { %s4607_s28 = smov 21  }
  0x14   :  { %5137 = sst [smem:[#allocation5_spill]] %s4694_s6 }
  0x15   :  { %s4719_s6 = sld [smem:[%s5130_s0 + %s4604_s7]]   ;;  %s4608_s7 = smov 22  }
  0x16   :  { %5138 = sst [smem:[#allocation6_spill]] %s4704_s20 }
  0x17   :  { %5139 = sst [smem:[#allocation7_spill]] %s4709_s27 }
  0x18   :  { %5140 = sst [smem:[#allocation8_spill]] %s4714_s4 }
  0x19   :  { %s4724_s20 = sld [smem:[%s5130_s0 + %s4605_s15]]   ;;  %s4609_s15 = smov 23  }
  0x1a   :  { %s4729_s27 = sld [smem:[%s5130_s0 + %s4606_s22]]   ;;  %s4610_s22 = smov 24  }
  0x1b   :  { %5141 = sst [smem:[#allocation9_spill]] %s4719_s6 }
  0x1c   :  { %s4734_s4 = sld [smem:[%s5130_s0 + %s4607_s28]]   ;;  %s4611_s28 = smov 25  }
  0x1d   :  { %s4739_s6 = sld [smem:[%s5130_s0 + %s4608_s7]]   ;;  %s4612_s7 = smov 26  }
  0x1f   :  { %5142 = sst [smem:[#allocation10_spill]] %s4724_s20 }
  0x20   :  { %5143 = sst [smem:[#allocation11_spill]] %s4729_s27 }
  0x21   :  { %s4744_s20 = sld [smem:[%s5130_s0 + %s4609_s15]]   ;;  %s4613_s15 = smov 27  }
  0x22   :  { %5144 = sst [smem:[#allocation12_spill]] %s4734_s4 }
  0x23   :  { %5145 = sst [smem:[#allocation13_spill]] %s4739_s6 }
  0x24   :  { %s4749_s27 = sld [smem:[%s5130_s0 + %s4610_s22]]   ;;  %s4614_s22 = smov 28  }
  0x25   :  { %s4754_s4 = sld [smem:[%s5130_s0 + %s4611_s28]]   ;;  %s4615_s28 = smov 29  }
  0x26   :  { %s4759_s6 = sld [smem:[%s5130_s0 + %s4612_s7]]   ;;  %s4616_s7 = smov 30  }
  0x27   :  { %5146 = sst [smem:[#allocation14_spill]] %s4744_s20 }
  0x28   :  { %s4764_s20 = sld [smem:[%s5130_s0 + %s4613_s15]]  }
  0x2a   :  { %5147 = sst [smem:[#allocation15_spill]] %s4749_s27 }
  0x2b   :  { %5148 = sst [smem:[#allocation16_spill]] %s4754_s4 }
  0x2c   :  { %5149 = sst [smem:[#allocation17_spill]] %s4759_s6 }
  0x2d   :  { %s4769_s27 = sld [smem:[%s5130_s0 + %s4614_s22]]  }
  0x2e   :  { %s4774_s4 = sld [smem:[%s5130_s0 + %s4615_s28]]  }
  0x2f   :  { %s4779_s6 = sld [smem:[%s5130_s0 + %s4616_s7]]  }
  0x30   :  { %v135_v0 = vld [vmem:[%s4634_s9] sm:$0xf]  ;;  %vm149_vm0 = vcmask 1043456   ;;  %v3815_v1 = vld [vmem:[%s4634_s9 + $0x4] sm:$0xf]  ;;  %vm136_vm1 = vcmask 31744  }
  0x31   :  { %v127_v2 = vld [vmem:[%s4629_s5] sm:$0xff]  ;;  %4159 = vmatprep.subr.msk.mxu0 %vm149_vm0, %v135_v0  ;;  %4167 = vmatprep.subr.msk.mxu1 %vm149_vm0, %v3815_v1  ;;  %v128_v3 = vld [vmem:[%s4629_s5 + $0x8] sm:$0xff]  ;;  %v129_v4 = vld [vmem:[%s4629_s5 + $0x10] sm:$0xff] }
  0x32   :  { %4160 = vmatpush3.msk.msra.mxu0 %vm149_vm0, %v135_v0  ;;  %4161 = vmatprep.mubr.msk.f32.mxu0 %vm136_vm1, %v127_v2 }
  0x33   :  { %66 = vsyncpa [#allocation3], 0  ;;  %4168 = vmatpush3.msk.msra.mxu1 %vm149_vm0, %v3815_v1  ;;  %4169 = vmatprep.mubr.msk.f32.mxu1 %vm136_vm1, %v127_v2  ;;  %v130_v5 = vld [vmem:[%s4629_s5 + $0x18] sm:$0xff]  ;;  %v3811_v6 = vld [vmem:[%s4639_s13 + $0x20] sm:$0xff]  ;;  %vm333_vm2 = vcmask 261120   ;;  %vm728_vm3 = vcmask 130048  }
  0x34   :  { %4162 = vmatmul.mubr.msk.f32.vlgmr.msra.gmra.mxu0 %vm136_vm1, %v128_v3  ;;  %4170 = vmatmul.mubr.msk.f32.vlgmr.msra.gmra.mxu1 %vm136_vm1, %v128_v3  ;;  %v131_v7 = vld [vmem:[%s4639_s13] sm:$0xff]  ;;  %v3812_v16 = vld [vmem:[%s4639_s13 + $0x28] sm:$0xff]  ;;  %v3813_v19 = vld [vmem:[%s4639_s13 + $0x30] sm:$0xff]  ;;  %vm917_vm4 = vcmask 228352   ;;  %vm1281_vm5 = vcmask 195584   ;;  %vm1445_vm6 = vcmask 113664  }
  0x35   :  { %4164 = vmatprep.mubr.msk.f32.mxu0 %vm136_vm1, %v129_v4  ;;  %4172 = vmatprep.mubr.msk.f32.mxu1 %vm136_vm1, %v129_v4  ;;  %v132_v17 = vld [vmem:[%s4639_s13 + $0x8] sm:$0xff]  ;;  %v133_v20 = vld [vmem:[%s4639_s13 + $0x10] sm:$0xff]  ;;  %v3814_v21 = vld [vmem:[%s4639_s13 + $0x38] sm:$0xf]  ;;  %vm1452_vm7 = vcmask 1045504   ;;  %s5150_s0 = sld [smem:[#allocation5_spill]] }
  0x36   :  { %v3833_v18 = vld [vmem:[%s4634_s9 + $0x8] sm:$0xf]  ;;  %v134_v22 = vld [vmem:[%s4639_s13 + $0x18] sm:$0xf]  ;;  %v3829_v23 = vld [vmem:[%s4639_s13 + $0x40] sm:$0xff]  ;;  %vm4618_vm8 = vmmov 0  }
  0x37   :  { %v3830_v32 = vld [vmem:[%s4639_s13 + $0x48] sm:$0xff]  ;;  %v3831_v33 = vld [vmem:[%s4639_s13 + $0x50] sm:$0xff]  ;;  %v3832_v34 = vld [vmem:[%s4639_s13 + $0x58] sm:$0xf]  ;;  %s5151_s5 = sld [smem:[#allocation6_spill]]  ;;  %vm2156_vm9 = vcmask 1041408  }
  0x38   :  { %4165 = vmatmul.mubr.msk.f32.gmra.mxu0 %vm136_vm1, %v130_v5  ;;  %4173 = vmatmul.mubr.msk.f32.gmra.mxu1 %vm136_vm1, %v130_v5  ;;  %v3850_v35 = vld [vmem:[%s4644_s17 + $0x18] sm:$0xff]  ;;  %v727_v36 = vld [vmem:[%s4644_s17 + $0x8] sm:$0xff]  ;;  %v726_v37 = vld [vmem:[%s4644_s17] sm:$0xff]  ;;  %s5152_s9 = sld [smem:[#allocation7_spill]]  ;;  %vm2152_vm10 = vcmask 80896   ;;  %vm3723_vm11 = vcmask 74752  }
  0x39   :  { %4183 = vmatprep.mubr.msk.f32.mxu0 %vm333_vm2, %v3811_v6  ;;  %4197 = vmatprep.mubr.msk.f32.mxu1 %vm333_vm2, %v131_v7  ;;  %v3849_v38 = vld [vmem:[%s4644_s17 + $0x10] sm:$0xff]  ;;  %v724_v56 = vld [vmem:[%s4649_s21] sm:$0xff]  ;;  %v3848_v1 = vld [vmem:[%s4649_s21 + $0x18] sm:$0x3f]  ;;  %s5153_s13 = sld [smem:[#allocation8_spill]]  ;;  %vm2865_vm12 = vcmask 64512  }
  0x3a   :  { %v3847_v55 = vld [vmem:[%s4649_s21 + $0x10] sm:$0xff] }
  0xf4   :  { %v4163_v8 = vpop.f32.mrf.mxu0  ;;  %v4171_v9 = vpop.f32.mrf.mxu1 }
  0xf6   :  { %v219_v10 = vpop.f32.mrf.mxu0  ;;  %v314_v11 = vpop.f32.mrf.mxu1 }
  0xf8   :  { %v4166_v12 = vpop.f32.mrf.mxu0  ;;  %v4174_v13 = vpop.f32.mrf.mxu1 }
  0xf9   :  { %4175 = vmatprep.subr.mxu0 %v4174_v13  ;;  %4189 = vmatprep.subr.mxu1 %v4166_v12 }
  0xfa   :  { %v229_v14 = vpop.f32.mrf.mxu0  ;;  %v324_v15 = vpop.f32.mrf.mxu1  ;;  %4176 = vmatpush3.msra.mxu0 %v4174_v13  ;;  %4190 = vmatpush3.msra.mxu1 %v4166_v12  ;;  %v3862_v12 = vld [vmem:[%s4649_s21 + $0x28] sm:$0x3f]  ;;  %v1280_v13 = vld [vmem:[%s4659_s29 + $0x10] sm:$0xff] }
  0xfb   :  { %4177 = vmatprep.subr.mxu0 %v324_v15  ;;  %4191 = vmatprep.subr.mxu1 %v229_v14 }
  0xfc   :  { %4178 = vmatpush3.msra.mxu0 %v324_v15  ;;  %4192 = vmatpush3.msra.mxu1 %v229_v14  ;;  %v3879_v14 = vld [vmem:[%s4659_s29 + $0x28] sm:$0xff] }
  0xfd   :  { %4179 = vmatprep.subr.mxu0 %v4171_v9  ;;  %4193 = vmatprep.subr.mxu1 %v4163_v8  ;;  %v1279_v15 = vld [vmem:[%s4659_s29 + $0x8] sm:$0xff] }
  0xfe   :  { %4180 = vmatpush3.msra.mxu0 %v4171_v9  ;;  %4194 = vmatpush3.msra.mxu1 %v4163_v8 }
  0xff   :  { %4181 = vmatprep.subr.mxu0 %v314_v11  ;;  %4195 = vmatprep.subr.mxu1 %v219_v10 }
 0x100   :  { %4182 = vmatpush3.msra.mxu0 %v314_v11  ;;  %4196 = vmatpush3.msra.mxu1 %v219_v10 }
 0x101   :  { %4184 = vmatmul.mubr.msk.f32.vlgmr.msra.gmra.mxu0 %vm333_vm2, %v3812_v16  ;;  %4198 = vmatmul.mubr.msk.f32.vlgmr.msra.gmra.mxu1 %vm333_vm2, %v132_v17  ;;  %v3878_v16 = vld [vmem:[%s4659_s29 + $0x20] sm:$0xff] }
 0x102   :  { %4203 = vmatprep.subr.msk.mxu0 %vm149_vm0, %v3833_v18  ;;  %4186 = vmatprep.mubr.msk.f32.mxu0 %vm333_vm2, %v3813_v19  ;;  %v1278_v17 = vld [vmem:[%s4659_s29] sm:$0xff] }
 0x103   :  { %4200 = vmatprep.mubr.msk.f32.mxu1 %vm333_vm2, %v133_v20  ;;  %4204 = vmatpush3.msk.msra.mxu0 %vm149_vm0, %v3833_v18  ;;  %v3877_v18 = vld [vmem:[%s4659_s29 + $0x18] sm:$0xff] }
 0x104   :  { %4225 = vmatprep.subr.mxu0 %v727_v36 }
 0x105   :  { %4187 = vmatmul.mubr.msk.f32.gmra.mxu0 %vm333_vm2, %v3814_v21  ;;  %4201 = vmatmul.mubr.msk.f32.gmra.mxu1 %vm333_vm2, %v134_v22 }
 0x106   :  { %4205 = vmatprep.mubr.msk.f32.mxu0 %vm136_vm1, %v127_v2  ;;  %4219 = vmatprep.mubr.msk.f32.mxu1 %vm333_vm2, %v3829_v23  ;;  %v725_v2 = vld [vmem:[%s4649_s21 + $0x8] sm:$0x3f]  ;;  %v3872_v23 = vld [vmem:[%s4654_s25] ss:$0 sm:$0xff]  ;;  %s5156_s25 = sld [smem:[#allocation11_spill]] }
 0x109   :  { %4206 = vmatmul.mubr.msk.f32.vlgmr.msra.gmra.mxu0 %vm136_vm1, %v128_v3  ;;  %v3864_v3 = vld [vmem:[%s4644_s17 + $0x28] sm:$0xff] }
 0x10a   :  { %4208 = vmatprep.mubr.msk.f32.mxu0 %vm136_vm1, %v129_v4  ;;  %4226 = vmatpush3.msra.mxu0 %v727_v36  ;;  %v3863_v4 = vld [vmem:[%s4644_s17 + $0x20] sm:$0xff]  ;;  %s5154_s17 = sld [smem:[#allocation10_spill]] }
 0x10b   :  { %4227 = vmatprep.subr.mxu0 %v726_v37 }
 0x10c   :  { %4228 = vmatpush3.msra.mxu0 %v726_v37 }
 0x10d   :  { %4209 = vmatmul.mubr.msk.f32.gmra.mxu0 %vm136_vm1, %v130_v5  ;;  %v3861_v5 = vld [vmem:[%s4649_s21 + $0x20] sm:$0xff]  ;;  %s5155_s21 = sld [smem:[#allocation9_spill]] }
 0x1c1   :  { %v4185_v24 = vpop.f32.mrf.mxu0  ;;  %v4199_v39 = vpop.f32.mrf.mxu1 }
 0x1c2   :  { %v515_v45 = vadd.f32 %v4199_v39, %v4185_v24 }
 0x1c3   :  { %v412_v25 = vpop.f32.mrf.mxu0  ;;  %v509_v40 = vpop.f32.mrf.mxu1 }
 0x1c4   :  { %v510_v44 = vadd.f32 %v509_v40, %v412_v25  ;;  %v3876_v40 = vld [vmem:[%s4664_s3 + $0x18] sm:$0x3f] }
 0x1c5   :  { %v4188_v26 = vpop.f32.mrf.mxu0  ;;  %v4202_v41 = vpop.f32.mrf.mxu1 }
 0x1c6   :  { %v525_v51 = vadd.f32 %v4202_v41, %v4188_v26  ;;  %v1277_v41 = vld [vmem:[%s4664_s3 + $0x8] sm:$0x3f] }
 0x1c7   :  { %v422_v27 = vpop.f32.mrf.mxu0  ;;  %v519_v42 = vpop.f32.mrf.mxu1 }
 0x1c8   :  { %v520_v50 = vadd.f32 %v519_v42, %v422_v27  ;;  %v3892_v42 = vld [vmem:[%s4659_s29 + $0x40] sm:$0xff] }
 0x1c9   :  { %v4207_v28 = vpop.f32.mrf.mxu0 }
 0x1cb   :  { %v604_v29 = vpop.f32.mrf.mxu0 }
 0x1cd   :  { %v4210_v30 = vpop.f32.mrf.mxu0 }
 0x1ce   :  { %4211 = vmatprep.subr.mxu1 %v4210_v30 }
 0x1cf   :  { %v614_v31 = vpop.f32.mrf.mxu0  ;;  %4212 = vmatpush3.msra.mxu1 %v4210_v30 }
 0x1d0   :  { %4213 = vmatprep.subr.mxu1 %v614_v31 }
 0x1d1   :  { %4214 = vmatpush3.msra.mxu1 %v614_v31 }
 0x1d2   :  { %4215 = vmatprep.subr.mxu1 %v4207_v28 }
 0x1d3   :  { %4216 = vmatpush3.msra.mxu1 %v4207_v28 }
 0x1d4   :  { %4217 = vmatprep.subr.mxu1 %v604_v29 }
 0x1d5   :  { %4218 = vmatpush3.msra.mxu1 %v604_v29 }
 0x1d6   :  { %4220 = vmatmul.mubr.msk.f32.vlgmr.msra.gmra.mxu1 %vm333_vm2, %v3830_v32  ;;  %4235 = vmatprep.subr.mxu1 %v3850_v35 }
 0x1d7   :  { %4222 = vmatprep.mubr.msk.f32.mxu1 %vm333_vm2, %v3831_v33  ;;  %4236 = vmatpush3.msra.mxu1 %v3850_v35  ;;  %v1276_v35 = vld [vmem:[%s4664_s3] sm:$0xff] }
 0x1d8   :  { %4237 = vmatprep.subr.mxu1 %v3849_v38 }
 0x1d9   :  { %4238 = vmatpush3.msra.mxu1 %v3849_v38 }
 0x1da   :  { %4223 = vmatmul.mubr.msk.f32.gmra.mxu1 %vm333_vm2, %v3832_v34  ;;  %v3875_v34 = vld [vmem:[%s4664_s3 + $0x10] sm:$0xff] }
 0x296   :  { %v4221_v43 = vpop.f32.mrf.mxu1 }
 0x297   :  { %v4836_v48 = vadd.f32 %v4221_v43, %v515_v45  ;;  %v3891_v43 = vld [vmem:[%s4659_s29 + $0x38] sm:$0xff]  ;;  %v1795_v45 = vld [vmem:[%s4674_s14 + $0x8] sm:$0xff] }
 0x298   :  { %v701_v46 = vpop.f32.mrf.mxu1 }
 0x299   :  { %v4834_v47 = vadd.f32 %v701_v46, %v510_v44  ;;  %v3890_v44 = vld [vmem:[%s4659_s29 + $0x30] sm:$0xff]  ;;  %v1794_v46 = vld [vmem:[%s4674_s14] sm:$0xff]  ;;  %s5157_s29 = sld [smem:[#allocation13_spill]] }
 0x29a   :  { %v4224_v49 = vpop.f32.mrf.mxu1  ;;  %s5160_s14 = sld [smem:[#allocation15_spill]] }
 0x29b   :  { %4229 = vmatprep.mubr.msk.f32.mxu0 %vm728_vm3, %v4834_v47  ;;  %4239 = vmatprep.mubr.msk.f32.mxu1 %vm728_vm3, %v4834_v47  ;;  %v4848_v54 = vadd.f32 %v4224_v49, %v525_v51  ;;  %v3888_v49 = vld [vmem:[%s4664_s3 + $0x20] sm:$0xff] }
 0x29c   :  { %v711_v52 = vpop.f32.mrf.mxu1  ;;  %4230 = vmatmul.mubr.msk.f32.vlgmr.msra.gmra.mxu0 %vm728_vm3, %v4836_v48  ;;  %4240 = vmatmul.mubr.msk.f32.vlgmr.msra.gmra.mxu1 %vm728_vm3, %v4836_v48 }
 0x29d   :  { %v4846_v53 = vadd.f32 %v711_v52, %v520_v50 }
 0x29f   :  { %4232 = vmatprep.mubr.msk.f32.mxu0 %vm728_vm3, %v4846_v53  ;;  %4242 = vmatprep.mubr.msk.f32.mxu1 %vm728_vm3, %v4846_v53 }
 0x2a0   :  { %4233 = vmatmul.mubr.msk.f32.gmra.mxu0 %vm728_vm3, %v4848_v54  ;;  %4243 = vmatmul.mubr.msk.f32.gmra.mxu1 %vm728_vm3, %v4848_v54 }
 0x2a1   :  { %4253 = vmatprep.mubr.msk.f32.mxu0 %vm917_vm4, %v3847_v55  ;;  %4264 = vmatprep.mubr.msk.f32.mxu1 %vm917_vm4, %v724_v56  ;;  %v3889_v55 = vld [vmem:[%s4664_s3 + $0x28] sm:$0x3f]  ;;  %s5158_s3 = sld [smem:[#allocation14_spill]] }
 0x35c   :  { %v4231_v57 = vpop.f32.mrf.mxu0  ;;  %v4241_v58 = vpop.f32.mrf.mxu1 }
 0x35e   :  { %v807_v59 = vpop.f32.mrf.mxu0  ;;  %v898_v60 = vpop.f32.mrf.mxu1 }
 0x360   :  { %v4234_v61 = vpop.f32.mrf.mxu0  ;;  %v4244_v62 = vpop.f32.mrf.mxu1 }
 0x361   :  { %4245 = vmatprep.subr.msk.mxu0 %vm149_vm0, %v4244_v62  ;;  %4256 = vmatprep.subr.msk.mxu1 %vm149_vm0, %v4234_v61 }
 0x362   :  { %v817_v63 = vpop.f32.mrf.mxu0  ;;  %v908_v0 = vpop.f32.mrf.mxu1  ;;  %4246 = vmatpush3.msk.msra.mxu0 %vm149_vm0, %v4244_v62  ;;  %4257 = vmatpush3.msk.msra.mxu1 %vm149_vm0, %v4234_v61  ;;  %v1980_v61 = vld [vmem:[%s4689_s30] sm:$0xff] }
 0x363   :  { %4247 = vmatprep.subr.mxu0 %v908_v0  ;;  %4258 = vmatprep.subr.mxu1 %v817_v63 }
 0x364   :  { %4248 = vmatpush3.msra.mxu0 %v908_v0  ;;  %4259 = vmatpush3.msra.mxu1 %v817_v63 }
 0x365   :  { %4249 = vmatprep.subr.mxu0 %v4241_v58  ;;  %4260 = vmatprep.subr.mxu1 %v4231_v57 }
 0x366   :  { %4250 = vmatpush3.msra.mxu0 %v4241_v58  ;;  %4261 = vmatpush3.msra.mxu1 %v4231_v57  ;;  %v1793_v58 = vld [vmem:[%s4679_s19 + $0x8] sm:$0x3f] }
 0x367   :  { %4251 = vmatprep.subr.mxu0 %v898_v60  ;;  %4262 = vmatprep.subr.mxu1 %v807_v59 }
 0x368   :  { %4252 = vmatpush3.msra.mxu0 %v898_v60  ;;  %4263 = vmatpush3.msra.mxu1 %v807_v59  ;;  %v1982_v59 = vld [vmem:[%s4689_s30 + $0x10] sm:$0xff]  ;;  %v1981_v60 = vld [vmem:[%s4689_s30 + $0x8] sm:$0xff]  ;;  %s4620_s30 = smov [#allocation2]  }
 0x369   :  { %4254 = vmatmul.mubr.msk.f32.vlgmr.msra.gmra.mxu0 %vm917_vm4, %v3848_v1  ;;  %4265 = vmatmul.mubr.msk.f32.vlgmr.msra.gmra.mxu1 %vm917_vm4, %v725_v2 }
 0x36a   :  { %4267 = vmatprep.subr.mxu0 %v3864_v3  ;;  %4271 = vmatprep.mubr.msk.f32.mxu0 %vm728_vm3, %v4834_v47 }
 0x36b   :  { %4268 = vmatpush3.msra.mxu0 %v3864_v3  ;;  %4285 = vmatprep.mubr.msk.f32.mxu1 %vm917_vm4, %v3861_v5  ;;  %v3903_v3 = vld [vmem:[%s4684_s24] ss:$0 sm:$0xff]  ;;  %s5162_s24 = sld [smem:[#allocation17_spill]] }
 0x36c   :  { %4269 = vmatprep.subr.mxu0 %v3863_v4 }
 0x36d   :  { %4270 = vmatpush3.msra.mxu0 %v3863_v4 }
 0x36e   :  { %4272 = vmatmul.mubr.msk.f32.vlgmr.msra.gmra.mxu0 %vm728_vm3, %v4836_v48  ;;  %4288 = vmatprep.subr.mxu0 %v1280_v13 }
 0x36f   :  { %4274 = vmatprep.mubr.msk.f32.mxu0 %vm728_vm3, %v4846_v53  ;;  %4289 = vmatpush3.msra.mxu0 %v1280_v13 }
 0x370   :  { %4290 = vmatprep.subr.mxu0 %v1279_v15 }
 0x371   :  { %4291 = vmatpush3.msra.mxu0 %v1279_v15 }
 0x372   :  { %4275 = vmatmul.mubr.msk.f32.gmra.mxu0 %vm728_vm3, %v4848_v54  ;;  %4292 = vmatprep.subr.mxu0 %v1278_v17 }
 0x373   :  { %4293 = vmatpush3.msra.mxu0 %v1278_v17 }
 0x429   :  { %v4255_v6 = vpop.f32.mrf.mxu0  ;;  %v4266_v19 = vpop.f32.mrf.mxu1 }
 0x42a   :  { %v1083_v21 = vadd.f32 %v4266_v19, %v4255_v6  ;;  %v3898_v6 = vld [vmem:[%s4669_s8] ss:$0 sm:$0xff]  ;;  %s5159_s8 = sld [smem:[#allocation16_spill]] }
 0x42b   :  { %v993_v7 = vpop.f32.mrf.mxu0  ;;  %v1077_v20 = vpop.f32.mrf.mxu1 }
 0x42c   :  { %v1078_v24 = vadd.f32 %v1077_v20, %v993_v7 }
 0x42e   :  { %v4273_v8 = vpop.f32.mrf.mxu0 }
 0x430   :  { %v1158_v9 = vpop.f32.mrf.mxu0 }
 0x432   :  { %v4276_v10 = vpop.f32.mrf.mxu0 }
 0x433   :  { %4277 = vmatprep.subr.msk.mxu1 %vm149_vm0, %v4276_v10 }
 0x434   :  { %v1168_v11 = vpop.f32.mrf.mxu0  ;;  %4278 = vmatpush3.msk.msra.mxu1 %vm149_vm0, %v4276_v10 }
 0x435   :  { %4279 = vmatprep.subr.mxu1 %v1168_v11 }
 0x436   :  { %4280 = vmatpush3.msra.mxu1 %v1168_v11 }
 0x437   :  { %4281 = vmatprep.subr.mxu1 %v4273_v8 }
 0x438   :  { %4282 = vmatpush3.msra.mxu1 %v4273_v8 }
 0x439   :  { %4283 = vmatprep.subr.mxu1 %v1158_v9 }
 0x43a   :  { %4284 = vmatpush3.msra.mxu1 %v1158_v9 }
 0x43b   :  { %4286 = vmatmul.mubr.msk.f32.vlgmr.msra.gmra.mxu1 %vm917_vm4, %v3862_v12  ;;  %4297 = vmatprep.subr.mxu1 %v3879_v14 }
 0x43c   :  { %4298 = vmatpush3.msra.mxu1 %v3879_v14 }
 0x43d   :  { %4299 = vmatprep.subr.mxu1 %v3878_v16 }
 0x43e   :  { %4300 = vmatpush3.msra.mxu1 %v3878_v16 }
 0x43f   :  { %4301 = vmatprep.subr.mxu1 %v3877_v18 }
 0x440   :  { %4302 = vmatpush3.msra.mxu1 %v3877_v18 }
 0x4fb   :  { %v4287_v22 = vpop.f32.mrf.mxu1 }
 0x4fc   :  { %v1262_v25 = vadd.f32 %v4287_v22, %v1083_v21  ;;  %v4617_v22 = vmov 0.0  }
 0x4fd   :  { %v1252_v26 = vpop.f32.mrf.mxu1 }
 0x4fe   :  { %v1271_v27 = vadd.f32 %v3872_v23, %v1262_v25  ;;  %v1261_v28 = vadd.f32 %v1252_v26, %v1078_v24  ;;  %v2150_v24 = vld [vmem:[%s4699_s12] sm:$0xff] }
 0x4ff   :  { %v3907_v25 = vld [vmem:[%s5150_s0] ss:$0 sm:$0xff] }
 0x500   :  { %v1270_v29 = vadd.f32 %v3872_v23, %v1261_v28  ;;  %v1273_v30 = vmax.f32 %v1271_v27, 0.0  ;;  %v2151_v23 = vld [vmem:[%s4699_s12 + $0x8] sm:$0x3]  ;;  %s3768_s12 = sshll.u32 %s4620_s30, 4  ;;  %s3769_s12 = int_to_ptr.vmem [resolvable:$true] %s3768_s12 }
 0x501   :  { %p4570_p1 = scmp.lt.s32.totalorder %s3769_s12, %s3769_s12 }
 0x502   :  { %v1272_v31 = vmax.f32 %v1270_v29, 0.0  ;;  %v1275_v33 = vmin.f32 %v1273_v30, 8.0 }
 0x504   :  { %v1274_v32 = vmin.f32 %v1272_v31, 8.0 }
 0x506   :  { %4294 = vmatprep.mubr.msk.f32.mxu0 %vm1281_vm5, %v1274_v32  ;;  %4303 = vmatprep.mubr.msk.f32.mxu1 %vm1281_vm5, %v1274_v32 }
 0x507   :  { %4295 = vmatmul.mubr.msk.f32.vlgmr.msra.gmra.mxu0 %vm1281_vm5, %v1275_v33  ;;  %4304 = vmatmul.mubr.msk.f32.vlgmr.msra.gmra.mxu1 %vm1281_vm5, %v1275_v33 }
 0x508   :  { %4310 = vmatprep.mubr.msk.f32.mxu0 %vm1445_vm6, %v3875_v34  ;;  %4317 = vmatprep.mubr.msk.f32.mxu1 %vm1445_vm6, %v1276_v35  ;;  %v2232_v34 = vld [vmem:[%s5152_s9 + $0x8] sm:$0xff]  ;;  %v2231_v35 = vld [vmem:[%s5152_s9] sm:$0xff] }
 0x5c7   :  { %v4296_v36 = vpop.f32.mrf.mxu0  ;;  %v4305_v37 = vpop.f32.mrf.mxu1 }
 0x5c8   :  { %4306 = vmatprep.subr.msk.mxu0 %vm1452_vm7, %v4305_v37  ;;  %4313 = vmatprep.subr.msk.mxu1 %vm1452_vm7, %v4296_v36 }
 0x5c9   :  { %v1354_v38 = vpop.f32.mrf.mxu0  ;;  %v1436_v39 = vpop.f32.mrf.mxu1  ;;  %4307 = vmatpush3.msk.msra.mxu0 %vm1452_vm7, %v4305_v37  ;;  %4314 = vmatpush3.msk.msra.mxu1 %vm1452_vm7, %v4296_v36  ;;  %v3919_v36 = vld [vmem:[%s5152_s9 + $0x28] sm:$0xff] }
 0x5ca   :  { %4308 = vmatprep.subr.mxu0 %v1436_v39  ;;  %4315 = vmatprep.subr.mxu1 %v1354_v38 }
 0x5cb   :  { %4309 = vmatpush3.msra.mxu0 %v1436_v39  ;;  %4316 = vmatpush3.msra.mxu1 %v1354_v38  ;;  %v3918_v38 = vld [vmem:[%s5152_s9 + $0x20] sm:$0xff] }
 0x5cc   :  { %4311 = vmatmul.mubr.msk.f32.vlgmr.msra.gmra.mxu0 %vm1445_vm6, %v3876_v40  ;;  %4318 = vmatmul.mubr.msk.f32.vlgmr.msra.gmra.mxu1 %vm1445_vm6, %v1277_v41  ;;  %v3917_v40 = vld [vmem:[%s5152_s9 + $0x18] sm:$0xff] }
 0x5cd   :  { %4320 = vmatprep.subr.mxu0 %v3892_v42  ;;  %4326 = vmatprep.mubr.msk.f32.mxu0 %vm1281_vm5, %v1274_v32  ;;  %v2073_v32 = vld [vmem:[%s5151_s5] sm:$0x3] }
 0x5ce   :  { %4321 = vmatpush3.msra.mxu0 %v3892_v42  ;;  %4333 = vmatprep.mubr.msk.f32.mxu1 %vm1445_vm6, %v3888_v49 }
 0x5cf   :  { %4322 = vmatprep.subr.mxu0 %v3891_v43 }
 0x5d0   :  { %4323 = vmatpush3.msra.mxu0 %v3891_v43  ;;  %v2230_v43 = vld [vmem:[%s5153_s13] sm:$0xff] }
 0x5d1   :  { %4324 = vmatprep.subr.mxu0 %v3890_v44 }
 0x5d2   :  { %4325 = vmatpush3.msra.mxu0 %v3890_v44 }
 0x5d3   :  { %4327 = vmatmul.mubr.msk.f32.vlgmr.msra.gmra.mxu0 %vm1281_vm5, %v1275_v33  ;;  %4336 = vmatprep.subr.mxu0 %v1795_v45  ;;  %v2233_v33 = vld [vmem:[%s5152_s9 + $0x10] sm:$0xff] }
 0x5d4   :  { %4337 = vmatpush3.msra.mxu0 %v1795_v45  ;;  %4340 = vmatprep.mubr.msk.f32.mxu0 %vm728_vm3, %v4834_v47 }
 0x5d5   :  { %4338 = vmatprep.subr.mxu0 %v1794_v46 }
 0x5d6   :  { %4339 = vmatpush3.msra.mxu0 %v1794_v46 }
 0x5d7   :  { %4341 = vmatmul.mubr.msk.f32.vlgmr.msra.gmra.mxu0 %vm728_vm3, %v4836_v48  ;;  %v1792_v48 = vld [vmem:[%s4679_s19] sm:$0xff]  ;;  %4357 = vmatprep.subr.mxu0 %v1982_v59  ;;  %s5161_s19 = sld [smem:[#allocation12_spill]] }
 0x5d8   :  { %4343 = vmatprep.mubr.msk.f32.mxu0 %vm728_vm3, %v4846_v53  ;;  %4358 = vmatpush3.msra.mxu0 %v1982_v59 }
 0x5d9   :  { %4359 = vmatprep.subr.mxu0 %v1981_v60 }
 0x5da   :  { %4360 = vmatpush3.msra.mxu0 %v1981_v60 }
 0x5db   :  { %4344 = vmatmul.mubr.msk.f32.gmra.mxu0 %vm728_vm3, %v4848_v54  ;;  %4361 = vmatprep.subr.mxu0 %v1980_v61 }
 0x5dc   :  { %4362 = vmatpush3.msra.mxu0 %v1980_v61  ;;  %v3926_v61 = vld [vmem:[%s5153_s13 + $0x10] sm:$0xff] }
 0x5dd   :  { %4373 = vmatprep.subr.mxu0 %v4617_v22 }
 0x68c   :  { %v4312_v50 = vpop.f32.mrf.mxu0  ;;  %v4319_v62 = vpop.f32.mrf.mxu1 }
 0x68d   :  { %v1612_v1 = vadd.f32 %v4319_v62, %v4312_v50 }
 0x68e   :  { %v1522_v51 = vpop.f32.mrf.mxu0  ;;  %v1606_v63 = vpop.f32.mrf.mxu1 }
 0x68f   :  { %v1607_v4 = vadd.f32 %v1606_v63, %v1522_v51  ;;  %v2714_v63 = vld [vmem:[%s5154_s17 + $0x18] sm:$0xff] }
 0x693   :  { %v4328_v52 = vpop.f32.mrf.mxu0 }
 0x694   :  { %4329 = vmatprep.subr.msk.mxu1 %vm1452_vm7, %v4328_v52 }
 0x695   :  { %v1688_v47 = vpop.f32.mrf.mxu0  ;;  %4330 = vmatpush3.msk.msra.mxu1 %vm1452_vm7, %v4328_v52 }
 0x696   :  { %4331 = vmatprep.subr.mxu1 %v1688_v47 }
 0x697   :  { %4332 = vmatpush3.msra.mxu1 %v1688_v47  ;;  %v4342_v53 = vpop.f32.mrf.mxu0  ;;  %v3916_v47 = vld [vmem:[%s5153_s13 + $0x8] sm:$0xff] }
 0x698   :  { %4334 = vmatmul.mubr.msk.f32.vlgmr.msra.gmra.mxu1 %vm1445_vm6, %v3889_v55  ;;  %v3929_v55 = vld [vmem:[%s5152_s9 + $0x40] sm:$0xff] }
 0x699   :  { %v1862_v54 = vpop.f32.mrf.mxu0  ;;  %4354 = vmatprep.mubr.msk.f32.mxu1 %vm917_vm4, %v1792_v48 }
 0x69b   :  { %v4345_v56 = vpop.f32.mrf.mxu0 }
 0x69c   :  { %4346 = vmatprep.subr.msk.mxu1 %vm149_vm0, %v4345_v56 }
 0x69d   :  { %v1872_v57 = vpop.f32.mrf.mxu0  ;;  %4347 = vmatpush3.msk.msra.mxu1 %vm149_vm0, %v4345_v56 }
 0x69e   :  { %4348 = vmatprep.subr.mxu1 %v1872_v57 }
 0x69f   :  { %4349 = vmatpush3.msra.mxu1 %v1872_v57 }
 0x6a0   :  { %4350 = vmatprep.subr.mxu1 %v4342_v53 }
 0x6a1   :  { %4351 = vmatpush3.msra.mxu1 %v4342_v53  ;;  %v3928_v53 = vld [vmem:[%s5152_s9 + $0x38] sm:$0xff] }
 0x6a2   :  { %4352 = vmatprep.subr.mxu1 %v1862_v54 }
 0x6a3   :  { %4353 = vmatpush3.msra.mxu1 %v1862_v54  ;;  %v3927_v54 = vld [vmem:[%s5152_s9 + $0x30] sm:$0xff] }
 0x6a4   :  { %4355 = vmatmul.mubr.msk.f32.vlgmr.msra.gmra.mxu1 %vm917_vm4, %v1793_v58  ;;  %4366 = vmatprep.subr.mxu1 %v4617_v22 }
 0x6a5   :  { %4370 = vmatprep.mubr.msk.f32.mxu1 %vm4618_vm8, %v4617_v22 }
 0x758   :  { %v4335_v0 = vpop.f32.mrf.mxu1 }
 0x759   :  { %v1782_v5 = vadd.f32 %v4335_v0, %v1612_v1  ;;  %v3940_v0 = vld [vmem:[%s5154_s17 + $0x38] sm:$0xff]  ;;  %v2713_v1 = vld [vmem:[%s5154_s17 + $0x10] sm:$0xff] }
 0x75a   :  { %v1772_v2 = vpop.f32.mrf.mxu1 }
 0x75b   :  { %v1781_v8 = vadd.f32 %v1772_v2, %v1607_v4  ;;  %v1791_v11 = vadd.f32 %v3898_v6, %v1782_v5  ;;  %v3939_v2 = vld [vmem:[%s5154_s17 + $0x30] sm:$0xff]  ;;  %v3938_v4 = vld [vmem:[%s5154_s17 + $0x28] sm:$0xff]  ;;  %v2711_v5 = vld [vmem:[%s5154_s17] sm:$0xff] }
 0x75d   :  { %v1790_v14 = vadd.f32 %v3898_v6, %v1781_v8  ;;  %v3937_v6 = vld [vmem:[%s5154_s17 + $0x20] sm:$0xff] }
 0x764   :  { %v4356_v7 = vpop.f32.mrf.mxu1 }
 0x765   :  { %v1969_v9 = vadd.f32 %v4356_v7, %v3903_v3 }
 0x766   :  { %v1963_v10 = vpop.f32.mrf.mxu1 }
 0x767   :  { %v1973_v12 = vmax.f32 %v1969_v9, 0.0  ;;  %v1964_v13 = vadd.f32 %v3903_v3, %v1963_v10  ;;  %v2712_v3 = vld [vmem:[%s5154_s17 + $0x8] sm:$0xff]  ;;  %v3934_v9 = vld [vmem:[%s5155_s21] ss:$0 sm:$0xff] }
 0x769   :  { %v1975_v15 = vadd.f32 %v1973_v12, %v1791_v11  ;;  %v1972_v16 = vmax.f32 %v1964_v13, 0.0 }
 0x76b   :  { %v1974_v17 = vadd.f32 %v1972_v16, %v1790_v14  ;;  %v1977_v18 = vmax.f32 %v1975_v15, 0.0  ;;  %v3936_v15 = vld [vmem:[%s5156_s25 + $0x8] sm:$0xff] }
 0x76d   :  { %v1976_v19 = vmax.f32 %v1974_v17, 0.0  ;;  %v4943_v21 = vmin.f32 %v1977_v18, 8.0  ;;  %v2710_v18 = vld [vmem:[%s5156_s25] sm:$0xff] }
 0x76f   :  { %v4941_v20 = vmin.f32 %v1976_v19, 8.0  ;;  %v3948_v19 = vld [vmem:[%s5154_s17 + $0x58] sm:$0xff] }
 0x771   :  { %4363 = vmatprep.mubr.msk.f32.mxu0 %vm1281_vm5, %v4941_v20 }
 0x772   :  { %4364 = vmatmul.mubr.msk.f32.vlgmr.msra.gmra.mxu0 %vm1281_vm5, %v4943_v21 }
 0x773   :  { %4377 = vmatprep.mubr.msk.f32.mxu0 %vm4618_vm8, %v4617_v22  ;;  %4374 = vmatpush3.msk.msra.mxu0 %vm2156_vm9, %v2151_v23 }
 0x774   :  { %4375 = vmatprep.subr.mxu0 %v4617_v22 }
 0x775   :  { %4376 = vmatpush3.msra.mxu0 %v2150_v24 }
 0x776   :  { %4389 = vmatprep.subr.mxu0 %v3919_v36 }
 0x832   :  { %v4365_v26 = vpop.f32.mrf.mxu0 }
 0x833   :  { %v2068_v27 = vadd.f32 %v4365_v26, %v3907_v25  ;;  %v3946_v26 = vld [vmem:[%s5154_s17 + $0x48] sm:$0xff] }
 0x834   :  { %v2062_v28 = vpop.f32.mrf.mxu0 }
 0x835   :  { %v2072_v29 = vmax.f32 %v2068_v27, 0.0  ;;  %v2063_v30 = vadd.f32 %v3907_v25, %v2062_v28  ;;  %v3947_v25 = vld [vmem:[%s5154_s17 + $0x50] sm:$0xff]  ;;  %v3945_v27 = vld [vmem:[%s5154_s17 + $0x40] sm:$0xff] }
 0x837   :  { %v2071_v31 = vmax.f32 %v2063_v30, 0.0  ;;  %4367 = vmatpush3.msk.msra.mxu1 %vm1452_vm7, %v2072_v29 }
 0x838   :  { %4368 = vmatprep.subr.mxu1 %v4617_v22 }
 0x839   :  { %4369 = vmatpush3.msra.mxu1 %v2071_v31 }
 0x83a   :  { %4371 = vmatmul.mubr.msk.f32.vlgmr.msra.gmra.mxu1 %vm1445_vm6, %v2073_v32  ;;  %4380 = vmatprep.subr.mxu1 %v2233_v33 }
 0x83b   :  { %4381 = vmatpush3.msra.mxu1 %v2233_v33  ;;  %4386 = vmatprep.mubr.msk.f32.mxu1 %vm1281_vm5, %v4941_v20  ;;  %v3944_v33 = vld [vmem:[%s5156_s25 + $0x10] sm:$0xff] }
 0x83c   :  { %4382 = vmatprep.subr.mxu1 %v2232_v34 }
 0x83d   :  { %4383 = vmatpush3.msra.mxu1 %v2232_v34  ;;  %v3174_v34 = vld [vmem:[%s5157_s29 + $0x10] sm:$0xff] }
 0x83e   :  { %4384 = vmatprep.subr.mxu1 %v2231_v35 }
 0x83f   :  { %4385 = vmatpush3.msra.mxu1 %v2231_v35 }
 0x840   :  { %4387 = vmatmul.mubr.msk.f32.vlgmr.msra.gmra.mxu1 %vm1281_vm5, %v4943_v21  ;;  %4398 = vmatprep.subr.mxu1 %v4617_v22 }
 0x841   :  { %4402 = vmatprep.mubr.msk.f32.mxu1 %vm4618_vm8, %v4617_v22 }
 0x8fa   :  { %v2146_v37 = vpop.f32.mrf.mxu1 }
 0x8fb   :  { %4378 = vmatmul.mubr.msk.f32.vlgmr.msra.gmra.mxu0 %vm2152_vm10, %v2146_v37 }
 0x8fc   :  { %4390 = vmatpush3.msra.mxu0 %v3919_v36  ;;  %v4372_v39 = vpop.f32.mrf.mxu1  ;;  %4395 = vmatprep.mubr.msk.f32.mxu0 %vm1281_vm5, %v4941_v20  ;;  %v3173_v36 = vld [vmem:[%s5157_s29 + $0x8] sm:$0xff] }
 0x8fd   :  { %4391 = vmatprep.subr.mxu0 %v3918_v38 }
 0x8fe   :  { %4392 = vmatpush3.msra.mxu0 %v3918_v38  ;;  %v3172_v38 = vld [vmem:[%s5157_s29] sm:$0xff] }
 0x8ff   :  { %4393 = vmatprep.subr.mxu0 %v3917_v40 }
 0x900   :  { %4394 = vmatpush3.msra.mxu0 %v3917_v40  ;;  %v4388_v41 = vpop.f32.mrf.mxu1 }
 0x901   :  { %4396 = vmatmul.mubr.msk.f32.vlgmr.msra.gmra.mxu0 %vm1281_vm5, %v4943_v21  ;;  %4405 = vmatprep.subr.mxu0 %v4617_v22 }
 0x902   :  { %4406 = vmatpush3.msk.msra.mxu0 %vm1452_vm7, %v4388_v41  ;;  %v2300_v42 = vpop.f32.mrf.mxu1  ;;  %4409 = vmatprep.mubr.msk.f32.mxu0 %vm4618_vm8, %v4617_v22 }
 0x903   :  { %4407 = vmatprep.subr.mxu0 %v4617_v22 }
 0x904   :  { %4408 = vmatpush3.msra.mxu0 %v2300_v42  ;;  %v3171_v42 = vld [vmem:[%s5158_s3] sm:$0xff] }
 0x905   :  { %4421 = vmatprep.subr.mxu0 %v4617_v22  ;;  %4410 = vmatmul.mubr.msk.f32.vlgmr.msra.gmra.mxu0 %vm1445_vm6, %v2230_v43 }
 0x906   :  { %4425 = vmatprep.mubr.msk.f32.mxu0 %vm4618_vm8, %v4617_v22 }
 0x9bb   :  { %v4992_v44 = vpop.f32.mrf.mxu0 }
 0x9bc   :  { %v3721_v45 = vmax.f32 %v4992_v44, -32.0 }
 0x9bd   :  { %v4379_v46 = vpop.f32.mrf.mxu0 }
 0x9be   :  { %v3722_v49 = vmin.f32 %v3721_v45, 31.999939  ;;  %v3339_v45 = vld [vmem:[%s5159_s8 + $0x10] sm:$0xff]  ;;  %v3338_v46 = vld [vmem:[%s5159_s8 + $0x8] sm:$0xff] }
 0x9c0   :  { %v3727_v50 = vsel %vm3723_vm11, %v3722_v49, -inf  ;;  %v3724_v51 = vsel %vm3723_vm11, %v3722_v49, 0.0  ;;  %v3337_v49 = vld [vmem:[%s5159_s8] sm:$0xff] }
 0x9c1   :  { %v4397_v52 = vpop.f32.mrf.mxu0  ;;  %3728 = vmax.xlane.f32.xlu0 %v3727_v50  ;;  %3725 = vadd.xlane.f32.xlu1 %v3724_v51  ;;  %v3954_v50 = vld [vmem:[%s5160_s14] ss:$0 sm:$0xff] }
 0x9c2   :  { %4399 = vmatpush3.msk.msra.mxu1 %vm1452_vm7, %v4397_v52  ;;  %v3951_v51 = vld [vmem:[%s5161_s19] ss:$0 sm:$0xff] }
 0x9c3   :  { %v2381_v48 = vpop.f32.mrf.mxu0  ;;  %4400 = vmatprep.subr.mxu1 %v4617_v22 }
 0x9c4   :  { %4401 = vmatpush3.msra.mxu1 %v2381_v48 }
 0x9c5   :  { %4403 = vmatmul.mubr.msk.f32.vlgmr.msra.gmra.mxu1 %vm1445_vm6, %v3916_v47  ;;  %4412 = vmatprep.subr.mxu1 %v3929_v55  ;;  %v2538_v56 = vpop.f32.mrf.mxu0 }
 0x9c6   :  { %4413 = vmatpush3.msra.mxu1 %v3929_v55  ;;  %4418 = vmatprep.mubr.msk.f32.mxu1 %vm1281_vm5, %v4941_v20 }
 0x9c7   :  { %4414 = vmatprep.subr.mxu1 %v3928_v53  ;;  %v4411_v57 = vpop.f32.mrf.mxu0 }
 0x9c8   :  { %4415 = vmatpush3.msra.mxu1 %v3928_v53 }
 0x9c9   :  { %4416 = vmatprep.subr.mxu1 %v3927_v54 }
 0x9ca   :  { %4417 = vmatpush3.msra.mxu1 %v3927_v54 }
 0x9cb   :  { %4419 = vmatmul.mubr.msk.f32.vlgmr.msra.gmra.mxu1 %vm1281_vm5, %v4943_v21  ;;  %4428 = vmatprep.subr.mxu1 %v4617_v22 }
 0x9cc   :  { %4436 = vmatprep.mubr.msk.f32.mxu1 %vm4618_vm8, %v4617_v22  ;;  %4429 = vmatpush3.msra.mxu1 %v2714_v63 }
 0x9cd   :  { %4430 = vmatprep.subr.mxu1 %v4617_v22 }
 0x9ce   :  { %4431 = vmatpush3.msra.mxu1 %v2713_v1  ;;  %v3496_v1 = vld [vmem:[%s4764_s20] sm:$0xff] }
 0x9cf   :  { %4432 = vmatprep.subr.mxu1 %v4617_v22 }
 0x9d0   :  { %4433 = vmatpush3.msra.mxu1 %v2712_v3 }
 0x9d1   :  { %4434 = vmatprep.subr.mxu1 %v4617_v22 }
 0x9d2   :  { %4435 = vmatpush3.msra.mxu1 %v2711_v5 }
 0x9d3   :  { %4450 = vmatprep.subr.mxu1 %v4617_v22 }
 0xa85   :  { %v2462_v58 = vpop.f32.mrf.mxu1 }
 0xa86   :  { %v2539_v7 = vadd.f32 %v2538_v56, %v2462_v58  ;;  %v3422_v58 = vld [vmem:[%s4769_s27] sm:$0x3] }
 0xa87   :  { %v4404_v59 = vpop.f32.mrf.mxu1 }
 0xa88   :  { %v3957_v59 = vld [vmem:[%s5162_s24] ss:$0 sm:$0xff] }
 0xa8b   :  { %v4420_v60 = vpop.f32.mrf.mxu1 }
 0xa8c   :  { %4422 = vmatpush3.msk.msra.mxu0 %vm1452_vm7, %v4420_v60 }
 0xa8d   :  { %v2614_v62 = vpop.f32.mrf.mxu1  ;;  %4423 = vmatprep.subr.mxu0 %v4617_v22 }
 0xa8e   :  { %4424 = vmatpush3.msra.mxu0 %v2614_v62 }
 0xa8f   :  { %4426 = vmatmul.mubr.msk.f32.vlgmr.msra.gmra.mxu0 %vm1445_vm6, %v3926_v61  ;;  %4439 = vmatprep.subr.mxu0 %v4617_v22 }
 0xa90   :  { %4447 = vmatprep.mubr.msk.f32.mxu0 %vm4618_vm8, %v4617_v22  ;;  %4440 = vmatpush3.msra.mxu0 %v3940_v0  ;;  %v3497_v0 = vld [vmem:[%s4764_s20 + $0x8] sm:$0x3]  ;;  %s4565_s20 = scalar_lea.vmem %s3769_s12, 32 }
 0xa91   :  { %4441 = vmatprep.subr.mxu0 %v4617_v22  ;;  %p4566_p0 = scmp.ne.s32.totalorder %s3769_s12, %s4565_s20  ;;  %p4571_p2 = scmp.lt.s32.totalorder %s4565_s20, %s4565_s20 }
 0xa92   :  { %4442 = vmatpush3.msra.mxu0 %v3939_v2 }
 0xa93   :  { %4443 = vmatprep.subr.mxu0 %v4617_v22  ;;  %p4572_p3 = por %p4571_p2, %p4570_p1 }
 0xa94   :  { %4444 = vmatpush3.msra.mxu0 %v3938_v4  ;;  %v3647_v4 = vld [vmem:[%s4774_s4 + $0x18] sm:$0xff] }
 0xa95   :  { %4445 = vmatprep.subr.mxu0 %v4617_v22  ;;  %p4573_p4 = pnand %p4572_p3, %p4566_p0 }
 0xa96   :  { %4446 = vmatpush3.msra.mxu0 %v3937_v6  ;;  %v3646_v6 = vld [vmem:[%s4774_s4 + $0x10] sm:$0xff] }
 0xa97   :  { %4455 = vmatprep.subr.mxu0 %v4617_v22 }
 0xb4f   :  { %v2695_v8 = vpop.f32.mrf.mxu0 }
 0xb50   :  { %v2699_v10 = vadd.f32 %v2695_v8, %v2539_v7  ;;  %v3645_v8 = vld [vmem:[%s4774_s4 + $0x8] sm:$0xff] }
 0xb51   :  { %v4427_v11 = vpop.f32.mrf.mxu0 }
 0xb52   :  { %v2707_v12 = vadd.f32 %v3934_v9, %v2699_v10  ;;  %v3644_v9 = vld [vmem:[%s4774_s4] sm:$0xff] }
 0xb54   :  { %v2708_v13 = vmax.f32 %v2707_v12, 0.0 }
 0xb56   :  { %v2709_v14 = vmin.f32 %v2708_v13, 8.0 }
 0xb58   :  { %4437 = vmatmul.mubr.msk.f32.vlgmr.msra.gmra.mxu1 %vm333_vm2, %v2709_v14  ;;  %4448 = vmatmul.mubr.msk.f32.vlgmr.msra.gmra.mxu0 %vm333_vm2, %v2709_v14 }
 0xb59   :  { %4452 = vmatprep.mubr.msk.f32.mxu1 %vm4618_vm8, %v4617_v22  ;;  %4457 = vmatprep.mubr.msk.f32.mxu0 %vm4618_vm8, %v4617_v22 }
 0xc18   :  { %v2784_v16 = vpop.f32.mrf.mxu1  ;;  %v2861_v17 = vpop.f32.mrf.mxu0 }
 0xc19   :  { %4451 = vmatpush3.msra.mxu1 %v2861_v17  ;;  %4456 = vmatpush3.msra.mxu0 %v2784_v16 }
 0xc1a   :  { %v4438_v23 = vpop.f32.mrf.mxu1  ;;  %v4449_v24 = vpop.f32.mrf.mxu0  ;;  %4453 = vmatmul.mubr.msk.f32.vlgmr.msra.gmra.mxu1 %vm2865_vm12, %v3936_v15  ;;  %4460 = vmatprep.subr.mxu1 %v4617_v22 }
 0xc1b   :  { %4458 = vmatmul.mubr.msk.f32.vlgmr.msra.gmra.mxu0 %vm2865_vm12, %v2710_v18  ;;  %4461 = vmatpush3.msra.mxu1 %v3948_v19  ;;  %v3729_v18 = vpop.xlane.xlu0 %3728  ;;  %v3726_v23 = vpop.xlane.xlu1 %3725 }
 0xc1c   :  { %4462 = vmatprep.subr.mxu1 %v4617_v22  ;;  %4468 = vmatprep.mubr.msk.f32.mxu1 %vm4618_vm8, %v4617_v22  ;;  %v3730_v19 = vmul.f32 10.0, %v3729_v18 }
 0xc1d   :  { %4463 = vmatpush3.msra.mxu1 %v3947_v25  ;;  %4471 = vmatprep.subr.mxu0 %v4617_v22 }
 0xc1e   :  { %4464 = vmatprep.subr.mxu1 %v4617_v22  ;;  %4473 = vmatprep.mubr.msk.f32.mxu0 %vm4618_vm8, %v4617_v22  ;;  %v3731_v24 = vsub.f32 %v3726_v23, %v3730_v19 }
 0xc1f   :  { %4465 = vmatpush3.msra.mxu1 %v3946_v26 }
 0xc20   :  { %4466 = vmatprep.subr.mxu1 %v4617_v22  ;;  %vm5119_vm13 = vcmp.lt.f32.partialorder %v3731_v24, -8.0 }
 0xc21   :  { %4467 = vmatpush3.msra.mxu1 %v3945_v27 }
 0xc22   :  { %4469 = vmatmul.mubr.msk.f32.vlgmr.msra.gmra.mxu1 %vm333_vm2, %v2709_v14  ;;  %4485 = vmatprep.subr.mxu1 %v4617_v22 }
 0xc23   :  { %4489 = vmatprep.mubr.msk.f32.mxu1 %vm4618_vm8, %v4617_v22 }
 0xcda   :  { %v2935_v28 = vpop.f32.mrf.mxu1 }
 0xcdb   :  { %v3008_v29 = vpop.f32.mrf.mxu0 }
 0xcdc   :  { %v3009_v30 = vadd.f32 %v3008_v29, %v2935_v28  ;;  %v4454_v31 = vpop.f32.mrf.mxu1  ;;  %v4619_v28 = vmov 1.0  }
 0xcdd   :  { %v4459_v32 = vpop.f32.mrf.mxu0  ;;  %v3738_v29 = vsel %vm5119_vm13, 0.0, %v4619_v28 }
 0xcde   :  { %vm3754_vm15 = vcmp.gt.f32.partialorder %v3738_v29, 0.0 }
 0xce2   :  { %v3085_v35 = vpop.f32.mrf.mxu1 }
 0xce3   :  { %4472 = vmatpush3.msra.mxu0 %v3085_v35 }
 0xce4   :  { %v4470_v37 = vpop.f32.mrf.mxu1  ;;  %4474 = vmatmul.mubr.msk.f32.vlgmr.msra.gmra.mxu0 %vm2865_vm12, %v3944_v33  ;;  %4476 = vmatprep.subr.mxu0 %v3174_v34  ;;  %v3735_v33 = vsel %vm5119_vm13, %v4992_v44, 0.0 }
 0xce5   :  { %4477 = vmatpush3.msra.mxu0 %v3174_v34  ;;  %4482 = vmatprep.mubr.msk.f32.mxu0 %vm1281_vm5, %v4941_v20 }
 0xce6   :  { %4478 = vmatprep.subr.mxu0 %v3173_v36 }
 0xce7   :  { %4479 = vmatpush3.msra.mxu0 %v3173_v36 }
 0xce8   :  { %4480 = vmatprep.subr.mxu0 %v3172_v38 }
 0xce9   :  { %4481 = vmatpush3.msra.mxu0 %v3172_v38 }
 0xcea   :  { %4483 = vmatmul.mubr.msk.f32.vlgmr.msra.gmra.mxu0 %vm1281_vm5, %v4943_v21  ;;  %4492 = vmatprep.subr.mxu0 %v4617_v22  ;;  %v3340_v21 = vld [vmem:[%s5159_s8 + $0x18] sm:$0xff] }
 0xceb   :  { %4500 = vmatprep.mubr.msk.f32.mxu0 %vm4618_vm8, %v4617_v22  ;;  %4493 = vmatpush3.msra.mxu0 %v3340_v21 }
 0xcec   :  { %4494 = vmatprep.subr.mxu0 %v4617_v22 }
 0xced   :  { %4495 = vmatpush3.msra.mxu0 %v3339_v45 }
 0xcee   :  { %4496 = vmatprep.subr.mxu0 %v4617_v22 }
 0xcef   :  { %4497 = vmatpush3.msra.mxu0 %v3338_v46 }
 0xcf0   :  { %4498 = vmatprep.subr.mxu0 %v4617_v22 }
 0xcf1   :  { %4499 = vmatpush3.msra.mxu0 %v3337_v49 }
 0xcf2   :  { %4515 = vmatprep.subr.mxu0 %v4617_v22 }
 0xda4   :  { %v3158_v39 = vpop.f32.mrf.mxu0 }
 0xda5   :  { %v3162_v40 = vadd.f32 %v3158_v39, %v3009_v30 }
 0xda6   :  { %v4475_v41 = vpop.f32.mrf.mxu0 }
 0xda7   :  { %v3170_v48 = vadd.f32 %v3951_v51, %v3162_v40 }
 0xdaa   :  { %v4484_v20 = vpop.f32.mrf.mxu0 }
 0xdab   :  { %4486 = vmatpush3.msk.msra.mxu1 %vm1452_vm7, %v4484_v20 }
 0xdac   :  { %v3241_v43 = vpop.f32.mrf.mxu0  ;;  %4487 = vmatprep.subr.mxu1 %v4617_v22 }
 0xdad   :  { %4488 = vmatpush3.msra.mxu1 %v3241_v43 }
 0xdae   :  { %4490 = vmatmul.mubr.msk.f32.vlgmr.msra.gmra.mxu1 %vm1445_vm6, %v3171_v42  ;;  %4503 = vmatprep.subr.mxu1 %v4617_v22 }
 0xdaf   :  { %4505 = vmatprep.mubr.msk.f32.mxu1 %vm4618_vm8, %v4617_v22 }
 0xe6e   :  { %v3329_v52 = vpop.f32.mrf.mxu1 }
 0xe6f   :  { %v3330_v47 = vadd.f32 %v3954_v50, %v3329_v52 }
 0xe70   :  { %v4491_v55 = vpop.f32.mrf.mxu1 }
 0xe71   :  { %v3333_v53 = vmax.f32 %v3330_v47, 0.0 }
 0xe73   :  { %v3334_v54 = vadd.f32 %v3333_v53, %v3170_v48 }
 0xe75   :  { %v3335_v56 = vmax.f32 %v3334_v54, 0.0 }
 0xe77   :  { %v3336_v57 = vmin.f32 %v3335_v56, 8.0 }
 0xe79   :  { %4501 = vmatmul.mubr.msk.f32.vlgmr.msra.gmra.mxu0 %vm333_vm2, %v3336_v57 }
 0xe7a   :  { %4516 = vmatpush3.msra.mxu0 %v3336_v57  ;;  %4517 = vmatprep.mubr.msk.f32.mxu0 %vm4618_vm8, %v4617_v22 }
 0xe7d   :  { %4518 = vmatmul.mubr.msk.f32.vlgmr.msra.gmra.mxu0 %vm2865_vm12, %v3422_v58 }
 0xf39   :  { %v3417_v60 = vpop.f32.mrf.mxu0 }
 0xf3a   :  { %v3418_v61 = vadd.f32 %v3957_v59, %v3417_v60 }
 0xf3b   :  { %v4502_v62 = vpop.f32.mrf.mxu0 }
 0xf3c   :  { %v3421_v63 = vmax.f32 %v3418_v61, 0.0 }
 0xf3d   :  { %v3640_v2 = vpop.f32.mrf.mxu0 }
 0xf3e   :  { %4504 = vmatpush3.msra.mxu1 %v3421_v63 }
 0xf3f   :  { %4506 = vmatmul.mubr.msk.f32.vlgmr.msra.gmra.mxu1 %vm2865_vm12, %v3422_v58  ;;  %4508 = vmatprep.subr.mxu1 %v4617_v22  ;;  %v4519_v3 = vpop.f32.mrf.mxu0 }
 0xf40   :  { %4509 = vmatpush3.msk.msra.mxu1 %vm2156_vm9, %v3497_v0  ;;  %4512 = vmatprep.mubr.msk.f32.mxu1 %vm4618_vm8, %v4617_v22 }
 0xf41   :  { %4510 = vmatprep.subr.mxu1 %v4617_v22 }
 0xf42   :  { %4511 = vmatpush3.msra.mxu1 %v3496_v1 }
 0xf43   :  { %4520 = vmatprep.subr.mxu1 %v4617_v22 }
 0xfff   :  { %v3492_v5 = vpop.f32.mrf.mxu1 }
0x1000   :  { %4513 = vmatmul.mubr.msk.f32.vlgmr.msra.gmra.mxu1 %vm2152_vm10, %v3492_v5 }
0x1001   :  { %v4507_v7 = vpop.f32.mrf.mxu1  ;;  %4521 = vmatpush3.msra.mxu1 %v3647_v4  ;;  %4528 = vmatprep.mubr.msk.f32.mxu1 %vm4618_vm8, %v4617_v22 }
0x1002   :  { %4522 = vmatprep.subr.mxu1 %v4617_v22 }
0x1003   :  { %4523 = vmatpush3.msra.mxu1 %v3646_v6 }
0x1004   :  { %4524 = vmatprep.subr.mxu1 %v4617_v22 }
0x1005   :  { %4525 = vmatpush3.msra.mxu1 %v3645_v8 }
0x1006   :  { %4526 = vmatprep.subr.mxu1 %v4617_v22 }
0x1007   :  { %4527 = vmatpush3.msra.mxu1 %v3644_v9 }
0x1008   :  { %4529 = vmatmul.mubr.msk.f32.vlgmr.msra.gmra.mxu1 %vm333_vm2, %v3640_v2 }
0x10c0   :  { %v3570_v10 = vpop.f32.mrf.mxu1 }
0x10c1   :  { %v3740_v11 = vmax.f32 %v3570_v10, -32.0 }
0x10c2   :  { %v4514_v12 = vpop.f32.mrf.mxu1 }
0x10c3   :  { %v3741_v13 = vmin.f32 %v3740_v11, 31.999939 }
0x10c5   :  { %v3745_v14 = vsel %vm3723_vm11, %v3741_v13, -inf  ;;  %v3742_v15 = vsel %vm3723_vm11, %v3741_v13, 0.0 }
0x10c6   :  { %3746 = vmax.xlane.f32.xlu0 %v3745_v14  ;;  %3743 = vadd.xlane.f32.xlu1 %v3742_v15 }
0x10c8   :  { %v3717_v16 = vpop.f32.mrf.mxu1 }
0x10ca   :  { %v4530_v17 = vpop.f32.mrf.mxu1 }
0x114f   :  { %v3747_v25 = vpop.xlane.xlu0 %3746  ;;  %v3744_v27 = vpop.xlane.xlu1 %3743 }
0x1150   :  { %v3748_v26 = vmul.f32 10.0, %v3747_v25 }
0x1152   :  { %v3749_v30 = vsub.f32 %v3744_v27, %v3748_v26 }
0x1154   :  { %vm3750_vm14 = vcmp.lt.f32.partialorder %v3749_v30, -6.0 }
0x1155   :  { %v3753_v31 = vsel %vm3750_vm14, %v3570_v10, 0.0  ;;  %v3756_v32 = vsel %vm3750_vm14, 0.0, %v3738_v29 }
0x1156   :  { %v3755_v34 = vsel %vm3754_vm15, %v3753_v31, 0.0  ;;  %vm3758_vm0 = vcmp.gt.f32.partialorder %v3756_v32, 0.0 }
0x1157   :  { %v3757_v35 = vadd.f32 %v3755_v34, %v3735_v33  ;;  %v3759_v36 = vsel %vm3758_vm0, %v3717_v16, 0.0 }
0x1159   :  { %v3760_v37 = vadd.f32 %v3759_v36, %v3757_v35 }
0x115b   :  { %3761 = vst.msk [vmem:[#allocation2] sm:$0x3] %vm3723_vm11, %v3760_v37 }
0x115c   :  { %4576 = shalt.err (!%p4573_p4)
}
0x115d   :  { %3771 = dma.vmem_to_hbm [thread:$0]  %s3769_s12, 32, %s4779_s6, [#allocation3]  }
0x115e   :  { %4585 = dma.done.wait [#allocation3], 32  }
0x115f   :  { %4586 = vsyncadd [#allocation3], 4294967264 }
0x1160   :  { %3775 = vsyncpa [#allocation3], 1 }

</bundles_post_ra>
